<compile_context>
chip_gen: v5e
topology: v5e:2x2
jax: 0.10.0
libtpu: 0.0.40
codegen_flags: <defaults>
</compile_context>

<pallas_src>
import math
import jax
import jax.numpy as jnp
from jax.experimental import pallas as pl
from jax.experimental.pallas import tpu as pltpu

# ------------------------- small, forward-consistent config -------------------------
IMG = 16          # image size
PATCH = 8         # patch size
CH = 3            # input channels
EMBED = 32        # embed_dim
DEPTH = 2         # number of transformer blocks
HEADS = 4         # num_heads
MLP_RATIO = 4
BATCH = 2
EPS = 1e-5        # nn.LayerNorm default eps

NUM_PATCHES = (IMG // PATCH) * (IMG // PATCH)   # 4
SEQ = NUM_PATCHES + 1                           # 5 real tokens (cls + patches)
SEQ_PAD = 8                                     # padded to a sublane multiple
BATCH_TILE = 2                                  # images packed per grid step
BN = BATCH_TILE * SEQ_PAD                       # 16 packed (padded) tokens
HEAD_DIM = EMBED // HEADS                       # 8
SCALE = HEAD_DIM ** -0.5
HIDDEN = EMBED * MLP_RATIO                      # 128
CPP = CH * PATCH * PATCH                        # 192

MM_DTYPE = jnp.float32    # matmul operand dtype (f32 is latency-neutral here)
NEG_BIG = -1e30


# ------------------------------- in-kernel helpers ----------------------------------
def _ln(x, g, b):
    mu = jnp.mean(x, axis=-1, keepdims=True)
    var = jnp.mean(jnp.square(x - mu), axis=-1, keepdims=True)
    return (x - mu) * jax.lax.rsqrt(var + EPS) * g + b


def _gelu(x):
    # TODO(synk): PyTorch nn.GELU default is exact erf GELU; using the tanh
    # approximation (erf lowering in Mosaic is not guaranteed; diff ~1e-3).
    c = math.sqrt(2.0 / math.pi)
    return 0.5 * x * (1.0 + jnp.tanh(c * (x + 0.044715 * x * x * x)))


# --------------------------------- fused Pallas kernel -------------------------------
def vit_kernel(xp_ref, bias_ref, wpatch_ref, tmpl_ref,
               g1_ref, b1_ref, wqkv_ref, wproj_ref, bproj_ref,
               g2_ref, b2_ref, w1_ref, bm1_ref, w2_ref, bm2_ref,
               gn_ref, bn_ref,
               out_ref):
    # ---- patch embedding + token assembly, fully in registers ----
    # xp rows are zero on cls/pad positions, so one matmul + one template add
    # yields the packed (BN, D) token tensor (cls+pos / patch+pos+bias / pad=0).
    x = (jnp.dot(xp_ref[...].astype(MM_DTYPE), wpatch_ref[...],
                 preferred_element_type=jnp.float32)
         + tmpl_ref[...])                                                    # (BN, D) f32

    bias3 = bias_ref[...]            # (HEADS, BN, BN) additive mask, pre-broadcast

    # ---- transformer blocks (static unrolled, weights stacked over DEPTH) ----
    for d in range(DEPTH):
        # pre-norm multi-head self-attention; fused QKV matmul (scale folded into Q cols)
        h = _ln(x, g1_ref[d], b1_ref[d]).astype(MM_DTYPE)                    # (BN, D)
        qkv = jnp.dot(h, wqkv_ref[d], preferred_element_type=jnp.float32)    # (BN, 3D)

        # per-head layout built at value level: lane slices + stack over heads
        q3 = jnp.stack([qkv[:, hi * HEAD_DIM:(hi + 1) * HEAD_DIM]
                        for hi in range(HEADS)], axis=0).astype(MM_DTYPE)    # (H, BN, hd)
        k3 = jnp.stack([qkv[:, EMBED + hi * HEAD_DIM:EMBED + (hi + 1) * HEAD_DIM]
                        for hi in range(HEADS)], axis=0).astype(MM_DTYPE)
        v3 = jnp.stack([qkv[:, 2 * EMBED + hi * HEAD_DIM:2 * EMBED + (hi + 1) * HEAD_DIM]
                        for hi in range(HEADS)], axis=0).astype(MM_DTYPE)

        # head-batched score / softmax / PV (bias kills cross-image + pad-token attention)
        s = jnp.einsum('hqd,hkd->hqk', q3, k3,
                       preferred_element_type=jnp.float32)                   # (H, BN, BN)
        s = s + bias3
        s = s - jnp.max(s, axis=-1, keepdims=True)
        p = jnp.exp(s)
        p = p * pl.reciprocal(jnp.sum(p, axis=-1, keepdims=True), approx=True)
        o3 = jnp.einsum('hqk,hkd->hqd', p.astype(MM_DTYPE), v3,
                        preferred_element_type=jnp.float32)                  # (H, BN, hd)

        attn = jnp.concatenate([o3[hi] for hi in range(HEADS)], axis=-1)     # (BN, D)
        y = jnp.dot(attn.astype(MM_DTYPE), wproj_ref[d],
                    preferred_element_type=jnp.float32) + bproj_ref[d]
        x = x + y                                                            # residual 1

        # pre-norm MLP
        h2 = _ln(x, g2_ref[d], b2_ref[d]).astype(MM_DTYPE)
        m = jnp.dot(h2, w1_ref[d], preferred_element_type=jnp.float32) + bm1_ref[d]
        m = _gelu(m)
        m = jnp.dot(m.astype(MM_DTYPE), w2_ref[d],
                    preferred_element_type=jnp.float32) + bm2_ref[d]
        x = x + m                                                            # residual 2

    # ---- final LayerNorm on the gathered cls rows only; single (BT, D) store ----
    cls = jnp.concatenate([x[b * SEQ_PAD:b * SEQ_PAD + 1, :]
                           for b in range(BATCH_TILE)], axis=0)              # (BT, D)
    out_ref[...] = _ln(cls, gn_ref[...], bn_ref[...]).astype(out_ref.dtype)


# --------------------------- deterministic parameter init ----------------------------
def _trunc_normal(key, shape, std=0.02):
    return std * jax.random.truncated_normal(key, -2.0, 2.0, shape, jnp.float32)


def init_params(key):
    keys = jax.random.split(key, 4 + DEPTH)
    p = {}
    # PatchEmbed conv (D, C, p, p) + bias
    p["conv_w"] = 0.02 * jax.random.normal(keys[0], (EMBED, CH, PATCH, PATCH), jnp.float32)
    p["conv_b"] = jnp.zeros((EMBED,), jnp.float32)
    # cls token / pos embed: trunc_normal std=0.02
    p["cls_token"] = _trunc_normal(keys[1], (1, 1, EMBED))
    p["pos_embed"] = _trunc_normal(keys[2], (1, SEQ, EMBED))
    blocks = []
    for i in range(DEPTH):
        k0, k1, k2, k3 = jax.random.split(keys[4 + i], 4)
        blocks.append({
            "g1": jnp.ones((1, EMBED), jnp.float32),
            "b1": jnp.zeros((1, EMBED), jnp.float32),
            "wqkv": _trunc_normal(k0, (EMBED, 3 * EMBED)),   # stored (in, out); qkv_bias=False
            "wproj": _trunc_normal(k1, (EMBED, EMBED)),
            "bproj": jnp.zeros((1, EMBED), jnp.float32),
            "g2": jnp.ones((1, EMBED), jnp.float32),
            "b2": jnp.zeros((1, EMBED), jnp.float32),
            "w1": _trunc_normal(k2, (EMBED, HIDDEN)),
            "bm1": jnp.zeros((1, HIDDEN), jnp.float32),
            "w2": _trunc_normal(k3, (HIDDEN, EMBED)),
            "bm2": jnp.zeros((1, EMBED), jnp.float32),
        })
    p["blocks"] = blocks
    p["norm_g"] = jnp.ones((1, EMBED), jnp.float32)
    p["norm_b"] = jnp.zeros((1, EMBED), jnp.float32)
    return p


def prepare_params(p):
    """Convert module-style params to the fused-kernel layout (done once)."""
    blocks = p["blocks"]

    def stack(f):
        return jnp.stack([f(b) for b in blocks], axis=0)

    # qkv re-fused as a single (D, 3D) weight; softmax scale folded into Q columns
    def fused_qkv(b):
        w = b["wqkv"]
        return jnp.concatenate([w[:, 0:EMBED] * SCALE, w[:, EMBED:3 * EMBED]], axis=-1)

    # token template (per image): row 0 = cls + pos0, rows 1..P = pos[1:] + conv bias,
    # rows P+1..SEQ_PAD-1 = 0 (pad).  Patch-embedding matmul adds the rest.
    tmpl_img = jnp.zeros((SEQ_PAD, EMBED), jnp.float32)
    tmpl_img = tmpl_img.at[0].set(p["cls_token"][0, 0] + p["pos_embed"][0, 0])
    tmpl_img = tmpl_img.at[1:1 + NUM_PATCHES].set(p["pos_embed"][0, 1:] + p["conv_b"][None, :])
    token_template = jnp.tile(tmpl_img, (BATCH_TILE, 1))                       # (BN, D)

    # additive attention bias, pre-broadcast over heads:
    # 0 iff (same image) AND (key is a real token); -1e30 otherwise.
    tok_img = jnp.repeat(jnp.arange(BATCH_TILE, dtype=jnp.int32), SEQ_PAD)     # (BN,)
    tok_pos = jnp.tile(jnp.arange(SEQ_PAD, dtype=jnp.int32), BATCH_TILE)       # (BN,)
    same = tok_img[:, None] == tok_img[None, :]
    valid_key = (tok_pos < SEQ)[None, :]
    bias2 = jnp.where(same & valid_key, 0.0, NEG_BIG).astype(jnp.float32)      # (BN, BN)
    bias3 = jnp.broadcast_to(bias2, (HEADS, BN, BN))                           # (H, BN, BN)

    prep = {
        # patch embedding as a matmul; flatten order (C, p, p) matches patch extraction
        "wpatch": p["conv_w"].reshape(EMBED, CPP).T.astype(MM_DTYPE),          # (CPP, D)
        "template": token_template,
        "attn_bias": bias3,
        # per-block weights stacked over DEPTH
        "g1": stack(lambda b: b["g1"]),
        "b1": stack(lambda b: b["b1"]),
        "wqkv": stack(fused_qkv).astype(MM_DTYPE),                             # (DEPTH, D, 3D)
        "wproj": stack(lambda b: b["wproj"]).astype(MM_DTYPE),
        "bproj": stack(lambda b: b["bproj"]),
        "g2": stack(lambda b: b["g2"]),
        "b2": stack(lambda b: b["b2"]),
        "w1": stack(lambda b: b["w1"]).astype(MM_DTYPE),
        "bm1": stack(lambda b: b["bm1"]),
        "w2": stack(lambda b: b["w2"]).astype(MM_DTYPE),
        "bm2": stack(lambda b: b["bm2"]),
        "gn": p["norm_g"],
        "bn": p["norm_b"],
    }
    return prep


# ------------------------------------ forward ----------------------------------------
def _const_spec(shape):
    nd = len(shape)
    return pl.BlockSpec(shape, lambda i: (0,) * nd)


def vit_forward(x, prep):
    """ViT.forward for a single crop: forward_features(x)[:, 0]; head = Identity."""
    B, C, H, W = x.shape
    assert C == CH and H == IMG and W == IMG and B % BATCH_TILE == 0
    hp, wp = H // PATCH, W // PATCH

    # patch extraction (layout plumbing stays in plain JAX); rows are pre-placed in the
    # padded per-image token layout: row 0 (cls) and rows SEQ..SEQ_PAD-1 (pad) are zero.
    patches = (x.reshape(B, C, hp, PATCH, wp, PATCH)
                .transpose(0, 2, 4, 1, 3, 5)
                .reshape(B, NUM_PATCHES, CPP))
    xp = (jnp.zeros((B, SEQ_PAD, CPP), jnp.float32)
          .at[:, 1:1 + NUM_PATCHES, :].set(patches)
          .reshape(B * SEQ_PAD, CPP))                                          # (B*8, CPP)

    args = [xp, prep["attn_bias"], prep["wpatch"], prep["template"],
            prep["g1"], prep["b1"], prep["wqkv"], prep["wproj"], prep["bproj"],
            prep["g2"], prep["b2"], prep["w1"], prep["bm1"], prep["w2"], prep["bm2"],
            prep["gn"], prep["bn"]]

    # per-grid-step (batch-tile) input spec; all weights use constant index maps so
    # they stay VMEM-resident across grid steps when B > BATCH_TILE.
    in_specs = [pl.BlockSpec((BATCH_TILE * SEQ_PAD, CPP), lambda i: (i, 0))]
    in_specs += [_const_spec(tuple(a.shape)) for a in args[1:]]

    out = pl.pallas_call(
        vit_kernel,
        out_shape=jax.ShapeDtypeStruct((B, EMBED), jnp.float32),
        grid=(B // BATCH_TILE,),
        in_specs=in_specs,
        out_specs=pl.BlockSpec((BATCH_TILE, EMBED), lambda i: (i, 0)),
        compiler_params=pltpu.CompilerParams(dimension_semantics=("parallel",)),
    )(*args)
    return out


if __name__ == "__main__":
    key = jax.random.PRNGKey(0)
    k_x, k_p = jax.random.split(key)
    x = jax.random.normal(k_x, (BATCH, CH, IMG, IMG), jnp.float32)   # NCHW like PyTorch
    params = init_params(k_p)
    prep = prepare_params(params)

    fwd = jax.jit(vit_forward)
    out = fwd(x, prep)
    out = jax.block_until_ready(out)
    assert out.shape == (BATCH, EMBED), out.shape
    assert bool(jnp.all(jnp.isfinite(out)))
    print("KERNEL_OK")
</pallas_src>

<mosaic_0001>
module attributes {stable_mosaic.version = 11 : i64} {
  func.func @vit_kernel(%arg0: i32, %arg1: memref<16x192xf32, #tpu.memory_space<vmem>>, %arg2: memref<4x16x16xf32, #tpu.memory_space<vmem>>, %arg3: memref<192x32xf32, #tpu.memory_space<vmem>>, %arg4: memref<16x32xf32, #tpu.memory_space<vmem>>, %arg5: memref<2x1x32xf32, #tpu.memory_space<vmem>>, %arg6: memref<2x1x32xf32, #tpu.memory_space<vmem>>, %arg7: memref<2x32x96xf32, #tpu.memory_space<vmem>>, %arg8: memref<2x32x32xf32, #tpu.memory_space<vmem>>, %arg9: memref<2x1x32xf32, #tpu.memory_space<vmem>>, %arg10: memref<2x1x32xf32, #tpu.memory_space<vmem>>, %arg11: memref<2x1x32xf32, #tpu.memory_space<vmem>>, %arg12: memref<2x32x128xf32, #tpu.memory_space<vmem>>, %arg13: memref<2x1x128xf32, #tpu.memory_space<vmem>>, %arg14: memref<2x128x32xf32, #tpu.memory_space<vmem>>, %arg15: memref<2x1x32xf32, #tpu.memory_space<vmem>>, %arg16: memref<1x32xf32, #tpu.memory_space<vmem>>, %arg17: memref<1x32xf32, #tpu.memory_space<vmem>>, %arg18: memref<2x32xf32, #tpu.memory_space<vmem>>) attributes {dimension_semantics = [#tpu.dimension_semantics<parallel>], iteration_bounds = array<i64: 1>, scalar_prefetch = 0 : i64, scratch_operands = 0 : i64, tpu.core_type = #tpu.core_type<tc>, window_params = [{transform_indices = @transform_0, window_bounds = array<i64: 16, 192>}, {pipeline_mode = #tpu.pipeline_mode<synchronous>, transform_indices = @transform_1, window_bounds = array<i64: 4, 16, 16>}, {pipeline_mode = #tpu.pipeline_mode<synchronous>, transform_indices = @transform_2, window_bounds = array<i64: 192, 32>}, {pipeline_mode = #tpu.pipeline_mode<synchronous>, transform_indices = @transform_3, window_bounds = array<i64: 16, 32>}, {pipeline_mode = #tpu.pipeline_mode<synchronous>, transform_indices = @transform_4, window_bounds = array<i64: 2, 1, 32>}, {pipeline_mode = #tpu.pipeline_mode<synchronous>, transform_indices = @transform_5, window_bounds = array<i64: 2, 1, 32>}, {pipeline_mode = #tpu.pipeline_mode<synchronous>, transform_indices = @transform_6, window_bounds = array<i64: 2, 32, 96>}, {pipeline_mode = #tpu.pipeline_mode<synchronous>, transform_indices = @transform_7, window_bounds = array<i64: 2, 32, 32>}, {pipeline_mode = #tpu.pipeline_mode<synchronous>, transform_indices = @transform_8, window_bounds = array<i64: 2, 1, 32>}, {pipeline_mode = #tpu.pipeline_mode<synchronous>, transform_indices = @transform_9, window_bounds = array<i64: 2, 1, 32>}, {pipeline_mode = #tpu.pipeline_mode<synchronous>, transform_indices = @transform_10, window_bounds = array<i64: 2, 1, 32>}, {pipeline_mode = #tpu.pipeline_mode<synchronous>, transform_indices = @transform_11, window_bounds = array<i64: 2, 32, 128>}, {pipeline_mode = #tpu.pipeline_mode<synchronous>, transform_indices = @transform_12, window_bounds = array<i64: 2, 1, 128>}, {pipeline_mode = #tpu.pipeline_mode<synchronous>, transform_indices = @transform_13, window_bounds = array<i64: 2, 128, 32>}, {pipeline_mode = #tpu.pipeline_mode<synchronous>, transform_indices = @transform_14, window_bounds = array<i64: 2, 1, 32>}, {pipeline_mode = #tpu.pipeline_mode<synchronous>, transform_indices = @transform_15, window_bounds = array<i64: 1, 32>}, {pipeline_mode = #tpu.pipeline_mode<synchronous>, transform_indices = @transform_16, window_bounds = array<i64: 1, 32>}, {transform_indices = @transform_17, window_bounds = array<i64: 2, 32>}]} {
    %c0 = arith.constant 0 : index
    %c0_0 = arith.constant 0 : index
    %0 = vector.load %arg1[%c0, %c0_0] : memref<16x192xf32, #tpu.memory_space<vmem>>, vector<16x192xf32>
    %c0_1 = arith.constant 0 : index
    %c0_2 = arith.constant 0 : index
    %1 = vector.load %arg3[%c0_1, %c0_2] : memref<192x32xf32, #tpu.memory_space<vmem>>, vector<192x32xf32>
    %cst = arith.constant dense<0.000000e+00> : vector<16x32xf32>
    %2 = tpu.matmul %0, %1, %cst {dimension_numbers = #tpu.dot_dimension_numbers<[1], [0], [0], [1], [0, 0, 1, 1], [], []>} : vector<16x192xf32>, vector<192x32xf32>, vector<16x32xf32> -> vector<16x32xf32>
    %c0_3 = arith.constant 0 : index
    %c0_4 = arith.constant 0 : index
    %3 = vector.load %arg4[%c0_3, %c0_4] : memref<16x32xf32, #tpu.memory_space<vmem>>, vector<16x32xf32>
    %4 = arith.addf %2, %3 : vector<16x32xf32>
    %c0_5 = arith.constant 0 : index
    %c0_6 = arith.constant 0 : index
    %c0_7 = arith.constant 0 : index
    %5 = vector.load %arg2[%c0_5, %c0_6, %c0_7] : memref<4x16x16xf32, #tpu.memory_space<vmem>>, vector<4x16x16xf32>
    %c0_8 = arith.constant 0 : index
    %c0_9 = arith.constant 0 : index
    %c0_10 = arith.constant 0 : index
    %6 = vector.load %arg5[%c0_8, %c0_9, %c0_10] : memref<2x1x32xf32, #tpu.memory_space<vmem>>, vector<1x1x32xf32>
    %7 = vector.shape_cast %6 : vector<1x1x32xf32> to vector<1x32xf32>
    %c0_11 = arith.constant 0 : index
    %c0_12 = arith.constant 0 : index
    %c0_13 = arith.constant 0 : index
    %8 = vector.load %arg6[%c0_11, %c0_12, %c0_13] : memref<2x1x32xf32, #tpu.memory_space<vmem>>, vector<1x1x32xf32>
    %9 = vector.shape_cast %8 : vector<1x1x32xf32> to vector<1x32xf32>
    %cst_14 = arith.constant dense<0.000000e+00> : vector<16xf32>
    %10 = vector.multi_reduction <add>, %4, %cst_14 [1] : vector<16x32xf32> to vector<16xf32>
    %11 = vector.shape_cast %10 : vector<16xf32> to vector<16x1xf32>
    %cst_15 = arith.constant 3.200000e+01 : f32
    %12 = vector.broadcast %cst_15 : f32 to vector<16x1xf32>
    %13 = arith.divf %11, %12 : vector<16x1xf32>
    %14 = vector.broadcast %13 : vector<16x1xf32> to vector<16x32xf32>
    %15 = arith.subf %4, %14 : vector<16x32xf32>
    %16 = arith.mulf %15, %15 : vector<16x32xf32>
    %cst_16 = arith.constant dense<0.000000e+00> : vector<16xf32>
    %17 = vector.multi_reduction <add>, %16, %cst_16 [1] : vector<16x32xf32> to vector<16xf32>
    %18 = vector.shape_cast %17 : vector<16xf32> to vector<16x1xf32>
    %cst_17 = arith.constant 3.200000e+01 : f32
    %19 = vector.broadcast %cst_17 : f32 to vector<16x1xf32>
    %20 = arith.divf %18, %19 : vector<16x1xf32>
    %21 = vector.broadcast %13 : vector<16x1xf32> to vector<16x32xf32>
    %22 = arith.subf %4, %21 : vector<16x32xf32>
    %cst_18 = arith.constant 9.99999974E-6 : f32
    %23 = vector.broadcast %cst_18 : f32 to vector<16x1xf32>
    %24 = arith.addf %20, %23 : vector<16x1xf32>
    %25 = math.rsqrt %24 : vector<16x1xf32>
    %26 = vector.broadcast %25 : vector<16x1xf32> to vector<16x32xf32>
    %27 = arith.mulf %22, %26 : vector<16x32xf32>
    %28 = vector.broadcast %7 : vector<1x32xf32> to vector<16x32xf32>
    %29 = arith.mulf %27, %28 : vector<16x32xf32>
    %30 = vector.broadcast %9 : vector<1x32xf32> to vector<16x32xf32>
    %31 = arith.addf %29, %30 : vector<16x32xf32>
    %c0_19 = arith.constant 0 : index
    %c0_20 = arith.constant 0 : index
    %c0_21 = arith.constant 0 : index
    %32 = vector.load %arg7[%c0_19, %c0_20, %c0_21] : memref<2x32x96xf32, #tpu.memory_space<vmem>>, vector<1x32x96xf32>
    %33 = vector.shape_cast %32 : vector<1x32x96xf32> to vector<32x96xf32>
    %cst_22 = arith.constant dense<0.000000e+00> : vector<16x96xf32>
    %34 = tpu.matmul %31, %33, %cst_22 {dimension_numbers = #tpu.dot_dimension_numbers<[1], [0], [0], [1], [0, 0, 1, 1], [], []>} : vector<16x32xf32>, vector<32x96xf32>, vector<16x96xf32> -> vector<16x96xf32>
    %35 = vector.extract_strided_slice %34 {offsets = [0, 0], sizes = [16, 8], strides = [1, 1]} : vector<16x96xf32> to vector<16x8xf32>
    %36 = vector.extract_strided_slice %34 {offsets = [0, 8], sizes = [16, 8], strides = [1, 1]} : vector<16x96xf32> to vector<16x8xf32>
    %37 = vector.extract_strided_slice %34 {offsets = [0, 16], sizes = [16, 8], strides = [1, 1]} : vector<16x96xf32> to vector<16x8xf32>
    %38 = vector.extract_strided_slice %34 {offsets = [0, 24], sizes = [16, 8], strides = [1, 1]} : vector<16x96xf32> to vector<16x8xf32>
    %39 = vector.shape_cast %35 : vector<16x8xf32> to vector<1x16x8xf32>
    %40 = vector.shape_cast %36 : vector<16x8xf32> to vector<1x16x8xf32>
    %41 = vector.shape_cast %37 : vector<16x8xf32> to vector<1x16x8xf32>
    %42 = vector.shape_cast %38 : vector<16x8xf32> to vector<1x16x8xf32>
    %43 = tpu.concatenate %39, %40, %41, %42 in 0 : vector<1x16x8xf32>, vector<1x16x8xf32>, vector<1x16x8xf32>, vector<1x16x8xf32> -> vector<4x16x8xf32>
    %44 = vector.extract_strided_slice %34 {offsets = [0, 32], sizes = [16, 8], strides = [1, 1]} : vector<16x96xf32> to vector<16x8xf32>
    %45 = vector.extract_strided_slice %34 {offsets = [0, 40], sizes = [16, 8], strides = [1, 1]} : vector<16x96xf32> to vector<16x8xf32>
    %46 = vector.extract_strided_slice %34 {offsets = [0, 48], sizes = [16, 8], strides = [1, 1]} : vector<16x96xf32> to vector<16x8xf32>
    %47 = vector.extract_strided_slice %34 {offsets = [0, 56], sizes = [16, 8], strides = [1, 1]} : vector<16x96xf32> to vector<16x8xf32>
    %48 = vector.shape_cast %44 : vector<16x8xf32> to vector<1x16x8xf32>
    %49 = vector.shape_cast %45 : vector<16x8xf32> to vector<1x16x8xf32>
    %50 = vector.shape_cast %46 : vector<16x8xf32> to vector<1x16x8xf32>
    %51 = vector.shape_cast %47 : vector<16x8xf32> to vector<1x16x8xf32>
    %52 = tpu.concatenate %48, %49, %50, %51 in 0 : vector<1x16x8xf32>, vector<1x16x8xf32>, vector<1x16x8xf32>, vector<1x16x8xf32> -> vector<4x16x8xf32>
    %53 = vector.extract_strided_slice %34 {offsets = [0, 64], sizes = [16, 8], strides = [1, 1]} : vector<16x96xf32> to vector<16x8xf32>
    %54 = vector.extract_strided_slice %34 {offsets = [0, 72], sizes = [16, 8], strides = [1, 1]} : vector<16x96xf32> to vector<16x8xf32>
    %55 = vector.extract_strided_slice %34 {offsets = [0, 80], sizes = [16, 8], strides = [1, 1]} : vector<16x96xf32> to vector<16x8xf32>
    %56 = vector.extract_strided_slice %34 {offsets = [0, 88], sizes = [16, 8], strides = [1, 1]} : vector<16x96xf32> to vector<16x8xf32>
    %57 = vector.shape_cast %53 : vector<16x8xf32> to vector<1x16x8xf32>
    %58 = vector.shape_cast %54 : vector<16x8xf32> to vector<1x16x8xf32>
    %59 = vector.shape_cast %55 : vector<16x8xf32> to vector<1x16x8xf32>
    %60 = vector.shape_cast %56 : vector<16x8xf32> to vector<1x16x8xf32>
    %61 = tpu.concatenate %57, %58, %59, %60 in 0 : vector<1x16x8xf32>, vector<1x16x8xf32>, vector<1x16x8xf32>, vector<1x16x8xf32> -> vector<4x16x8xf32>
    "tpu.trace_start"() <{level = 10 : i32, message = "hqd,hkd->hqk"}> : () -> ()
    %cst_23 = arith.constant dense<0.000000e+00> : vector<4x16x16xf32>
    %62 = tpu.matmul %43, %52, %cst_23 {dimension_numbers = #tpu.dot_dimension_numbers<[2], [2], [1], [1], [0, 0, 0, 1, 1, 1], [0], [0]>} : vector<4x16x8xf32>, vector<4x16x8xf32>, vector<4x16x16xf32> -> vector<4x16x16xf32>
    "tpu.trace_stop"() : () -> ()
    %63 = arith.addf %62, %5 : vector<4x16x16xf32>
    %cst_24 = arith.constant dense<0xFF800000> : vector<4x16xf32>
    %64 = vector.multi_reduction <maximumf>, %63, %cst_24 [2] : vector<4x16x16xf32> to vector<4x16xf32>
    %65 = vector.shape_cast %64 : vector<4x16xf32> to vector<4x16x1xf32>
    %66 = vector.broadcast %65 : vector<4x16x1xf32> to vector<4x16x16xf32>
    %67 = arith.subf %63, %66 : vector<4x16x16xf32>
    %68 = math.exp %67 : vector<4x16x16xf32>
    %cst_25 = arith.constant dense<0.000000e+00> : vector<4x16xf32>
    %69 = vector.multi_reduction <add>, %68, %cst_25 [2] : vector<4x16x16xf32> to vector<4x16xf32>
    %70 = vector.shape_cast %69 : vector<4x16xf32> to vector<4x16x1xf32>
    %71 = tpu.reciprocal %70 {approx = true} : vector<4x16x1xf32> -> vector<4x16x1xf32>
    %72 = vector.broadcast %71 : vector<4x16x1xf32> to vector<4x16x16xf32>
    %73 = arith.mulf %68, %72 : vector<4x16x16xf32>
    "tpu.trace_start"() <{level = 10 : i32, message = "hqk,hkd->hqd"}> : () -> ()
    %cst_26 = arith.constant dense<0.000000e+00> : vector<4x16x8xf32>
    %74 = tpu.matmul %73, %61, %cst_26 {dimension_numbers = #tpu.dot_dimension_numbers<[2], [1], [1], [2], [0, 0, 0, 1, 1, 2], [0], [0]>} : vector<4x16x16xf32>, vector<4x16x8xf32>, vector<4x16x8xf32> -> vector<4x16x8xf32>
    "tpu.trace_stop"() : () -> ()
    %75 = vector.extract_strided_slice %74 {offsets = [0, 0, 0], sizes = [1, 16, 8], strides = [1, 1, 1]} : vector<4x16x8xf32> to vector<1x16x8xf32>
    %76 = vector.shape_cast %75 : vector<1x16x8xf32> to vector<16x8xf32>
    %77 = vector.extract_strided_slice %74 {offsets = [1, 0, 0], sizes = [1, 16, 8], strides = [1, 1, 1]} : vector<4x16x8xf32> to vector<1x16x8xf32>
    %78 = vector.shape_cast %77 : vector<1x16x8xf32> to vector<16x8xf32>
    %79 = vector.extract_strided_slice %74 {offsets = [2, 0, 0], sizes = [1, 16, 8], strides = [1, 1, 1]} : vector<4x16x8xf32> to vector<1x16x8xf32>
    %80 = vector.shape_cast %79 : vector<1x16x8xf32> to vector<16x8xf32>
    %81 = vector.extract_strided_slice %74 {offsets = [3, 0, 0], sizes = [1, 16, 8], strides = [1, 1, 1]} : vector<4x16x8xf32> to vector<1x16x8xf32>
    %82 = vector.shape_cast %81 : vector<1x16x8xf32> to vector<16x8xf32>
    %83 = tpu.concatenate %76, %78, %80, %82 in 1 : vector<16x8xf32>, vector<16x8xf32>, vector<16x8xf32>, vector<16x8xf32> -> vector<16x32xf32>
    %c0_27 = arith.constant 0 : index
    %c0_28 = arith.constant 0 : index
    %c0_29 = arith.constant 0 : index
    %84 = vector.load %arg8[%c0_27, %c0_28, %c0_29] : memref<2x32x32xf32, #tpu.memory_space<vmem>>, vector<1x32x32xf32>
    %85 = vector.shape_cast %84 : vector<1x32x32xf32> to vector<32x32xf32>
    %cst_30 = arith.constant dense<0.000000e+00> : vector<16x32xf32>
    %86 = tpu.matmul %83, %85, %cst_30 {dimension_numbers = #tpu.dot_dimension_numbers<[1], [0], [0], [1], [0, 0, 1, 1], [], []>} : vector<16x32xf32>, vector<32x32xf32>, vector<16x32xf32> -> vector<16x32xf32>
    %c0_31 = arith.constant 0 : index
    %c0_32 = arith.constant 0 : index
    %c0_33 = arith.constant 0 : index
    %87 = vector.load %arg9[%c0_31, %c0_32, %c0_33] : memref<2x1x32xf32, #tpu.memory_space<vmem>>, vector<1x1x32xf32>
    %88 = vector.shape_cast %87 : vector<1x1x32xf32> to vector<1x32xf32>
    %89 = vector.broadcast %88 : vector<1x32xf32> to vector<16x32xf32>
    %90 = arith.addf %86, %89 : vector<16x32xf32>
    %91 = arith.addf %4, %90 : vector<16x32xf32>
    %c0_34 = arith.constant 0 : index
    %c0_35 = arith.constant 0 : index
    %c0_36 = arith.constant 0 : index
    %92 = vector.load %arg10[%c0_34, %c0_35, %c0_36] : memref<2x1x32xf32, #tpu.memory_space<vmem>>, vector<1x1x32xf32>
    %93 = vector.shape_cast %92 : vector<1x1x32xf32> to vector<1x32xf32>
    %c0_37 = arith.constant 0 : index
    %c0_38 = arith.constant 0 : index
    %c0_39 = arith.constant 0 : index
    %94 = vector.load %arg11[%c0_37, %c0_38, %c0_39] : memref<2x1x32xf32, #tpu.memory_space<vmem>>, vector<1x1x32xf32>
    %95 = vector.shape_cast %94 : vector<1x1x32xf32> to vector<1x32xf32>
    %cst_40 = arith.constant dense<0.000000e+00> : vector<16xf32>
    %96 = vector.multi_reduction <add>, %91, %cst_40 [1] : vector<16x32xf32> to vector<16xf32>
    %97 = vector.shape_cast %96 : vector<16xf32> to vector<16x1xf32>
    %cst_41 = arith.constant 3.200000e+01 : f32
    %98 = vector.broadcast %cst_41 : f32 to vector<16x1xf32>
    %99 = arith.divf %97, %98 : vector<16x1xf32>
    %100 = vector.broadcast %99 : vector<16x1xf32> to vector<16x32xf32>
    %101 = arith.subf %91, %100 : vector<16x32xf32>
    %102 = arith.mulf %101, %101 : vector<16x32xf32>
    %cst_42 = arith.constant dense<0.000000e+00> : vector<16xf32>
    %103 = vector.multi_reduction <add>, %102, %cst_42 [1] : vector<16x32xf32> to vector<16xf32>
    %104 = vector.shape_cast %103 : vector<16xf32> to vector<16x1xf32>
    %cst_43 = arith.constant 3.200000e+01 : f32
    %105 = vector.broadcast %cst_43 : f32 to vector<16x1xf32>
    %106 = arith.divf %104, %105 : vector<16x1xf32>
    %107 = vector.broadcast %99 : vector<16x1xf32> to vector<16x32xf32>
    %108 = arith.subf %91, %107 : vector<16x32xf32>
    %cst_44 = arith.constant 9.99999974E-6 : f32
    %109 = vector.broadcast %cst_44 : f32 to vector<16x1xf32>
    %110 = arith.addf %106, %109 : vector<16x1xf32>
    %111 = math.rsqrt %110 : vector<16x1xf32>
    %112 = vector.broadcast %111 : vector<16x1xf32> to vector<16x32xf32>
    %113 = arith.mulf %108, %112 : vector<16x32xf32>
    %114 = vector.broadcast %93 : vector<1x32xf32> to vector<16x32xf32>
    %115 = arith.mulf %113, %114 : vector<16x32xf32>
    %116 = vector.broadcast %95 : vector<1x32xf32> to vector<16x32xf32>
    %117 = arith.addf %115, %116 : vector<16x32xf32>
    %c0_45 = arith.constant 0 : index
    %c0_46 = arith.constant 0 : index
    %c0_47 = arith.constant 0 : index
    %118 = vector.load %arg12[%c0_45, %c0_46, %c0_47] : memref<2x32x128xf32, #tpu.memory_space<vmem>>, vector<1x32x128xf32>
    %119 = vector.shape_cast %118 : vector<1x32x128xf32> to vector<32x128xf32>
    %cst_48 = arith.constant dense<0.000000e+00> : vector<16x128xf32>
    %120 = tpu.matmul %117, %119, %cst_48 {dimension_numbers = #tpu.dot_dimension_numbers<[1], [0], [0], [1], [0, 0, 1, 1], [], []>} : vector<16x32xf32>, vector<32x128xf32>, vector<16x128xf32> -> vector<16x128xf32>
    %c0_49 = arith.constant 0 : index
    %c0_50 = arith.constant 0 : index
    %c0_51 = arith.constant 0 : index
    %121 = vector.load %arg13[%c0_49, %c0_50, %c0_51] : memref<2x1x128xf32, #tpu.memory_space<vmem>>, vector<1x1x128xf32>
    %122 = vector.shape_cast %121 : vector<1x1x128xf32> to vector<1x128xf32>
    %123 = vector.broadcast %122 : vector<1x128xf32> to vector<16x128xf32>
    %124 = arith.addf %120, %123 : vector<16x128xf32>
    %cst_52 = arith.constant 5.000000e-01 : f32
    %125 = vector.broadcast %cst_52 : f32 to vector<16x128xf32>
    %126 = arith.mulf %125, %124 : vector<16x128xf32>
    %cst_53 = arith.constant 4.471500e-02 : f32
    %127 = vector.broadcast %cst_53 : f32 to vector<16x128xf32>
    %128 = arith.mulf %127, %124 : vector<16x128xf32>
    %129 = arith.mulf %128, %124 : vector<16x128xf32>
    %130 = arith.mulf %129, %124 : vector<16x128xf32>
    %131 = arith.addf %124, %130 : vector<16x128xf32>
    %cst_54 = arith.constant 0.797884583 : f32
    %132 = vector.broadcast %cst_54 : f32 to vector<16x128xf32>
    %133 = arith.mulf %132, %131 : vector<16x128xf32>
    %134 = math.tanh %133 : vector<16x128xf32>
    %cst_55 = arith.constant 1.000000e+00 : f32
    %135 = vector.broadcast %cst_55 : f32 to vector<16x128xf32>
    %136 = arith.addf %135, %134 : vector<16x128xf32>
    %137 = arith.mulf %126, %136 : vector<16x128xf32>
    %c0_56 = arith.constant 0 : index
    %c0_57 = arith.constant 0 : index
    %c0_58 = arith.constant 0 : index
    %138 = vector.load %arg14[%c0_56, %c0_57, %c0_58] : memref<2x128x32xf32, #tpu.memory_space<vmem>>, vector<1x128x32xf32>
    %139 = vector.shape_cast %138 : vector<1x128x32xf32> to vector<128x32xf32>
    %cst_59 = arith.constant dense<0.000000e+00> : vector<16x32xf32>
    %140 = tpu.matmul %137, %139, %cst_59 {dimension_numbers = #tpu.dot_dimension_numbers<[1], [0], [0], [1], [0, 0, 1, 1], [], []>} : vector<16x128xf32>, vector<128x32xf32>, vector<16x32xf32> -> vector<16x32xf32>
    %c0_60 = arith.constant 0 : index
    %c0_61 = arith.constant 0 : index
    %c0_62 = arith.constant 0 : index
    %141 = vector.load %arg15[%c0_60, %c0_61, %c0_62] : memref<2x1x32xf32, #tpu.memory_space<vmem>>, vector<1x1x32xf32>
    %142 = vector.shape_cast %141 : vector<1x1x32xf32> to vector<1x32xf32>
    %143 = vector.broadcast %142 : vector<1x32xf32> to vector<16x32xf32>
    %144 = arith.addf %140, %143 : vector<16x32xf32>
    %145 = arith.addf %91, %144 : vector<16x32xf32>
    %c1 = arith.constant 1 : index
    %c0_63 = arith.constant 0 : index
    %c0_64 = arith.constant 0 : index
    %146 = vector.load %arg5[%c1, %c0_63, %c0_64] : memref<2x1x32xf32, #tpu.memory_space<vmem>>, vector<1x1x32xf32>
    %147 = vector.shape_cast %146 : vector<1x1x32xf32> to vector<1x32xf32>
    %c1_65 = arith.constant 1 : index
    %c0_66 = arith.constant 0 : index
    %c0_67 = arith.constant 0 : index
    %148 = vector.load %arg6[%c1_65, %c0_66, %c0_67] : memref<2x1x32xf32, #tpu.memory_space<vmem>>, vector<1x1x32xf32>
    %149 = vector.shape_cast %148 : vector<1x1x32xf32> to vector<1x32xf32>
    %cst_68 = arith.constant dense<0.000000e+00> : vector<16xf32>
    %150 = vector.multi_reduction <add>, %145, %cst_68 [1] : vector<16x32xf32> to vector<16xf32>
    %151 = vector.shape_cast %150 : vector<16xf32> to vector<16x1xf32>
    %cst_69 = arith.constant 3.200000e+01 : f32
    %152 = vector.broadcast %cst_69 : f32 to vector<16x1xf32>
    %153 = arith.divf %151, %152 : vector<16x1xf32>
    %154 = vector.broadcast %153 : vector<16x1xf32> to vector<16x32xf32>
    %155 = arith.subf %145, %154 : vector<16x32xf32>
    %156 = arith.mulf %155, %155 : vector<16x32xf32>
    %cst_70 = arith.constant dense<0.000000e+00> : vector<16xf32>
    %157 = vector.multi_reduction <add>, %156, %cst_70 [1] : vector<16x32xf32> to vector<16xf32>
    %158 = vector.shape_cast %157 : vector<16xf32> to vector<16x1xf32>
    %cst_71 = arith.constant 3.200000e+01 : f32
    %159 = vector.broadcast %cst_71 : f32 to vector<16x1xf32>
    %160 = arith.divf %158, %159 : vector<16x1xf32>
    %161 = vector.broadcast %153 : vector<16x1xf32> to vector<16x32xf32>
    %162 = arith.subf %145, %161 : vector<16x32xf32>
    %cst_72 = arith.constant 9.99999974E-6 : f32
    %163 = vector.broadcast %cst_72 : f32 to vector<16x1xf32>
    %164 = arith.addf %160, %163 : vector<16x1xf32>
    %165 = math.rsqrt %164 : vector<16x1xf32>
    %166 = vector.broadcast %165 : vector<16x1xf32> to vector<16x32xf32>
    %167 = arith.mulf %162, %166 : vector<16x32xf32>
    %168 = vector.broadcast %147 : vector<1x32xf32> to vector<16x32xf32>
    %169 = arith.mulf %167, %168 : vector<16x32xf32>
    %170 = vector.broadcast %149 : vector<1x32xf32> to vector<16x32xf32>
    %171 = arith.addf %169, %170 : vector<16x32xf32>
    %c1_73 = arith.constant 1 : index
    %c0_74 = arith.constant 0 : index
    %c0_75 = arith.constant 0 : index
    %172 = vector.load %arg7[%c1_73, %c0_74, %c0_75] : memref<2x32x96xf32, #tpu.memory_space<vmem>>, vector<1x32x96xf32>
    %173 = vector.shape_cast %172 : vector<1x32x96xf32> to vector<32x96xf32>
    %cst_76 = arith.constant dense<0.000000e+00> : vector<16x96xf32>
    %174 = tpu.matmul %171, %173, %cst_76 {dimension_numbers = #tpu.dot_dimension_numbers<[1], [0], [0], [1], [0, 0, 1, 1], [], []>} : vector<16x32xf32>, vector<32x96xf32>, vector<16x96xf32> -> vector<16x96xf32>
    %175 = vector.extract_strided_slice %174 {offsets = [0, 0], sizes = [16, 8], strides = [1, 1]} : vector<16x96xf32> to vector<16x8xf32>
    %176 = vector.extract_strided_slice %174 {offsets = [0, 8], sizes = [16, 8], strides = [1, 1]} : vector<16x96xf32> to vector<16x8xf32>
    %177 = vector.extract_strided_slice %174 {offsets = [0, 16], sizes = [16, 8], strides = [1, 1]} : vector<16x96xf32> to vector<16x8xf32>
    %178 = vector.extract_strided_slice %174 {offsets = [0, 24], sizes = [16, 8], strides = [1, 1]} : vector<16x96xf32> to vector<16x8xf32>
    %179 = vector.shape_cast %175 : vector<16x8xf32> to vector<1x16x8xf32>
    %180 = vector.shape_cast %176 : vector<16x8xf32> to vector<1x16x8xf32>
    %181 = vector.shape_cast %177 : vector<16x8xf32> to vector<1x16x8xf32>
    %182 = vector.shape_cast %178 : vector<16x8xf32> to vector<1x16x8xf32>
    %183 = tpu.concatenate %179, %180, %181, %182 in 0 : vector<1x16x8xf32>, vector<1x16x8xf32>, vector<1x16x8xf32>, vector<1x16x8xf32> -> vector<4x16x8xf32>
    %184 = vector.extract_strided_slice %174 {offsets = [0, 32], sizes = [16, 8], strides = [1, 1]} : vector<16x96xf32> to vector<16x8xf32>
    %185 = vector.extract_strided_slice %174 {offsets = [0, 40], sizes = [16, 8], strides = [1, 1]} : vector<16x96xf32> to vector<16x8xf32>
    %186 = vector.extract_strided_slice %174 {offsets = [0, 48], sizes = [16, 8], strides = [1, 1]} : vector<16x96xf32> to vector<16x8xf32>
    %187 = vector.extract_strided_slice %174 {offsets = [0, 56], sizes = [16, 8], strides = [1, 1]} : vector<16x96xf32> to vector<16x8xf32>
    %188 = vector.shape_cast %184 : vector<16x8xf32> to vector<1x16x8xf32>
    %189 = vector.shape_cast %185 : vector<16x8xf32> to vector<1x16x8xf32>
    %190 = vector.shape_cast %186 : vector<16x8xf32> to vector<1x16x8xf32>
    %191 = vector.shape_cast %187 : vector<16x8xf32> to vector<1x16x8xf32>
    %192 = tpu.concatenate %188, %189, %190, %191 in 0 : vector<1x16x8xf32>, vector<1x16x8xf32>, vector<1x16x8xf32>, vector<1x16x8xf32> -> vector<4x16x8xf32>
    %193 = vector.extract_strided_slice %174 {offsets = [0, 64], sizes = [16, 8], strides = [1, 1]} : vector<16x96xf32> to vector<16x8xf32>
    %194 = vector.extract_strided_slice %174 {offsets = [0, 72], sizes = [16, 8], strides = [1, 1]} : vector<16x96xf32> to vector<16x8xf32>
    %195 = vector.extract_strided_slice %174 {offsets = [0, 80], sizes = [16, 8], strides = [1, 1]} : vector<16x96xf32> to vector<16x8xf32>
    %196 = vector.extract_strided_slice %174 {offsets = [0, 88], sizes = [16, 8], strides = [1, 1]} : vector<16x96xf32> to vector<16x8xf32>
    %197 = vector.shape_cast %193 : vector<16x8xf32> to vector<1x16x8xf32>
    %198 = vector.shape_cast %194 : vector<16x8xf32> to vector<1x16x8xf32>
    %199 = vector.shape_cast %195 : vector<16x8xf32> to vector<1x16x8xf32>
    %200 = vector.shape_cast %196 : vector<16x8xf32> to vector<1x16x8xf32>
    %201 = tpu.concatenate %197, %198, %199, %200 in 0 : vector<1x16x8xf32>, vector<1x16x8xf32>, vector<1x16x8xf32>, vector<1x16x8xf32> -> vector<4x16x8xf32>
    "tpu.trace_start"() <{level = 10 : i32, message = "hqd,hkd->hqk"}> : () -> ()
    %cst_77 = arith.constant dense<0.000000e+00> : vector<4x16x16xf32>
    %202 = tpu.matmul %183, %192, %cst_77 {dimension_numbers = #tpu.dot_dimension_numbers<[2], [2], [1], [1], [0, 0, 0, 1, 1, 1], [0], [0]>} : vector<4x16x8xf32>, vector<4x16x8xf32>, vector<4x16x16xf32> -> vector<4x16x16xf32>
    "tpu.trace_stop"() : () -> ()
    %203 = arith.addf %202, %5 : vector<4x16x16xf32>
    %cst_78 = arith.constant dense<0xFF800000> : vector<4x16xf32>
    %204 = vector.multi_reduction <maximumf>, %203, %cst_78 [2] : vector<4x16x16xf32> to vector<4x16xf32>
    %205 = vector.shape_cast %204 : vector<4x16xf32> to vector<4x16x1xf32>
    %206 = vector.broadcast %205 : vector<4x16x1xf32> to vector<4x16x16xf32>
    %207 = arith.subf %203, %206 : vector<4x16x16xf32>
    %208 = math.exp %207 : vector<4x16x16xf32>
    %cst_79 = arith.constant dense<0.000000e+00> : vector<4x16xf32>
    %209 = vector.multi_reduction <add>, %208, %cst_79 [2] : vector<4x16x16xf32> to vector<4x16xf32>
    %210 = vector.shape_cast %209 : vector<4x16xf32> to vector<4x16x1xf32>
    %211 = tpu.reciprocal %210 {approx = true} : vector<4x16x1xf32> -> vector<4x16x1xf32>
    %212 = vector.broadcast %211 : vector<4x16x1xf32> to vector<4x16x16xf32>
    %213 = arith.mulf %208, %212 : vector<4x16x16xf32>
    "tpu.trace_start"() <{level = 10 : i32, message = "hqk,hkd->hqd"}> : () -> ()
    %cst_80 = arith.constant dense<0.000000e+00> : vector<4x16x8xf32>
    %214 = tpu.matmul %213, %201, %cst_80 {dimension_numbers = #tpu.dot_dimension_numbers<[2], [1], [1], [2], [0, 0, 0, 1, 1, 2], [0], [0]>} : vector<4x16x16xf32>, vector<4x16x8xf32>, vector<4x16x8xf32> -> vector<4x16x8xf32>
    "tpu.trace_stop"() : () -> ()
    %215 = vector.extract_strided_slice %214 {offsets = [0, 0, 0], sizes = [1, 16, 8], strides = [1, 1, 1]} : vector<4x16x8xf32> to vector<1x16x8xf32>
    %216 = vector.shape_cast %215 : vector<1x16x8xf32> to vector<16x8xf32>
    %217 = vector.extract_strided_slice %214 {offsets = [1, 0, 0], sizes = [1, 16, 8], strides = [1, 1, 1]} : vector<4x16x8xf32> to vector<1x16x8xf32>
    %218 = vector.shape_cast %217 : vector<1x16x8xf32> to vector<16x8xf32>
    %219 = vector.extract_strided_slice %214 {offsets = [2, 0, 0], sizes = [1, 16, 8], strides = [1, 1, 1]} : vector<4x16x8xf32> to vector<1x16x8xf32>
    %220 = vector.shape_cast %219 : vector<1x16x8xf32> to vector<16x8xf32>
    %221 = vector.extract_strided_slice %214 {offsets = [3, 0, 0], sizes = [1, 16, 8], strides = [1, 1, 1]} : vector<4x16x8xf32> to vector<1x16x8xf32>
    %222 = vector.shape_cast %221 : vector<1x16x8xf32> to vector<16x8xf32>
    %223 = tpu.concatenate %216, %218, %220, %222 in 1 : vector<16x8xf32>, vector<16x8xf32>, vector<16x8xf32>, vector<16x8xf32> -> vector<16x32xf32>
    %c1_81 = arith.constant 1 : index
    %c0_82 = arith.constant 0 : index
    %c0_83 = arith.constant 0 : index
    %224 = vector.load %arg8[%c1_81, %c0_82, %c0_83] : memref<2x32x32xf32, #tpu.memory_space<vmem>>, vector<1x32x32xf32>
    %225 = vector.shape_cast %224 : vector<1x32x32xf32> to vector<32x32xf32>
    %cst_84 = arith.constant dense<0.000000e+00> : vector<16x32xf32>
    %226 = tpu.matmul %223, %225, %cst_84 {dimension_numbers = #tpu.dot_dimension_numbers<[1], [0], [0], [1], [0, 0, 1, 1], [], []>} : vector<16x32xf32>, vector<32x32xf32>, vector<16x32xf32> -> vector<16x32xf32>
    %c1_85 = arith.constant 1 : index
    %c0_86 = arith.constant 0 : index
    %c0_87 = arith.constant 0 : index
    %227 = vector.load %arg9[%c1_85, %c0_86, %c0_87] : memref<2x1x32xf32, #tpu.memory_space<vmem>>, vector<1x1x32xf32>
    %228 = vector.shape_cast %227 : vector<1x1x32xf32> to vector<1x32xf32>
    %229 = vector.broadcast %228 : vector<1x32xf32> to vector<16x32xf32>
    %230 = arith.addf %226, %229 : vector<16x32xf32>
    %231 = arith.addf %145, %230 : vector<16x32xf32>
    %c1_88 = arith.constant 1 : index
    %c0_89 = arith.constant 0 : index
    %c0_90 = arith.constant 0 : index
    %232 = vector.load %arg10[%c1_88, %c0_89, %c0_90] : memref<2x1x32xf32, #tpu.memory_space<vmem>>, vector<1x1x32xf32>
    %233 = vector.shape_cast %232 : vector<1x1x32xf32> to vector<1x32xf32>
    %c1_91 = arith.constant 1 : index
    %c0_92 = arith.constant 0 : index
    %c0_93 = arith.constant 0 : index
    %234 = vector.load %arg11[%c1_91, %c0_92, %c0_93] : memref<2x1x32xf32, #tpu.memory_space<vmem>>, vector<1x1x32xf32>
    %235 = vector.shape_cast %234 : vector<1x1x32xf32> to vector<1x32xf32>
    %cst_94 = arith.constant dense<0.000000e+00> : vector<16xf32>
    %236 = vector.multi_reduction <add>, %231, %cst_94 [1] : vector<16x32xf32> to vector<16xf32>
    %237 = vector.shape_cast %236 : vector<16xf32> to vector<16x1xf32>
    %cst_95 = arith.constant 3.200000e+01 : f32
    %238 = vector.broadcast %cst_95 : f32 to vector<16x1xf32>
    %239 = arith.divf %237, %238 : vector<16x1xf32>
    %240 = vector.broadcast %239 : vector<16x1xf32> to vector<16x32xf32>
    %241 = arith.subf %231, %240 : vector<16x32xf32>
    %242 = arith.mulf %241, %241 : vector<16x32xf32>
    %cst_96 = arith.constant dense<0.000000e+00> : vector<16xf32>
    %243 = vector.multi_reduction <add>, %242, %cst_96 [1] : vector<16x32xf32> to vector<16xf32>
    %244 = vector.shape_cast %243 : vector<16xf32> to vector<16x1xf32>
    %cst_97 = arith.constant 3.200000e+01 : f32
    %245 = vector.broadcast %cst_97 : f32 to vector<16x1xf32>
    %246 = arith.divf %244, %245 : vector<16x1xf32>
    %247 = vector.broadcast %239 : vector<16x1xf32> to vector<16x32xf32>
    %248 = arith.subf %231, %247 : vector<16x32xf32>
    %cst_98 = arith.constant 9.99999974E-6 : f32
    %249 = vector.broadcast %cst_98 : f32 to vector<16x1xf32>
    %250 = arith.addf %246, %249 : vector<16x1xf32>
    %251 = math.rsqrt %250 : vector<16x1xf32>
    %252 = vector.broadcast %251 : vector<16x1xf32> to vector<16x32xf32>
    %253 = arith.mulf %248, %252 : vector<16x32xf32>
    %254 = vector.broadcast %233 : vector<1x32xf32> to vector<16x32xf32>
    %255 = arith.mulf %253, %254 : vector<16x32xf32>
    %256 = vector.broadcast %235 : vector<1x32xf32> to vector<16x32xf32>
    %257 = arith.addf %255, %256 : vector<16x32xf32>
    %c1_99 = arith.constant 1 : index
    %c0_100 = arith.constant 0 : index
    %c0_101 = arith.constant 0 : index
    %258 = vector.load %arg12[%c1_99, %c0_100, %c0_101] : memref<2x32x128xf32, #tpu.memory_space<vmem>>, vector<1x32x128xf32>
    %259 = vector.shape_cast %258 : vector<1x32x128xf32> to vector<32x128xf32>
    %cst_102 = arith.constant dense<0.000000e+00> : vector<16x128xf32>
    %260 = tpu.matmul %257, %259, %cst_102 {dimension_numbers = #tpu.dot_dimension_numbers<[1], [0], [0], [1], [0, 0, 1, 1], [], []>} : vector<16x32xf32>, vector<32x128xf32>, vector<16x128xf32> -> vector<16x128xf32>
    %c1_103 = arith.constant 1 : index
    %c0_104 = arith.constant 0 : index
    %c0_105 = arith.constant 0 : index
    %261 = vector.load %arg13[%c1_103, %c0_104, %c0_105] : memref<2x1x128xf32, #tpu.memory_space<vmem>>, vector<1x1x128xf32>
    %262 = vector.shape_cast %261 : vector<1x1x128xf32> to vector<1x128xf32>
    %263 = vector.broadcast %262 : vector<1x128xf32> to vector<16x128xf32>
    %264 = arith.addf %260, %263 : vector<16x128xf32>
    %cst_106 = arith.constant 5.000000e-01 : f32
    %265 = vector.broadcast %cst_106 : f32 to vector<16x128xf32>
    %266 = arith.mulf %265, %264 : vector<16x128xf32>
    %cst_107 = arith.constant 4.471500e-02 : f32
    %267 = vector.broadcast %cst_107 : f32 to vector<16x128xf32>
    %268 = arith.mulf %267, %264 : vector<16x128xf32>
    %269 = arith.mulf %268, %264 : vector<16x128xf32>
    %270 = arith.mulf %269, %264 : vector<16x128xf32>
    %271 = arith.addf %264, %270 : vector<16x128xf32>
    %cst_108 = arith.constant 0.797884583 : f32
    %272 = vector.broadcast %cst_108 : f32 to vector<16x128xf32>
    %273 = arith.mulf %272, %271 : vector<16x128xf32>
    %274 = math.tanh %273 : vector<16x128xf32>
    %cst_109 = arith.constant 1.000000e+00 : f32
    %275 = vector.broadcast %cst_109 : f32 to vector<16x128xf32>
    %276 = arith.addf %275, %274 : vector<16x128xf32>
    %277 = arith.mulf %266, %276 : vector<16x128xf32>
    %c1_110 = arith.constant 1 : index
    %c0_111 = arith.constant 0 : index
    %c0_112 = arith.constant 0 : index
    %278 = vector.load %arg14[%c1_110, %c0_111, %c0_112] : memref<2x128x32xf32, #tpu.memory_space<vmem>>, vector<1x128x32xf32>
    %279 = vector.shape_cast %278 : vector<1x128x32xf32> to vector<128x32xf32>
    %cst_113 = arith.constant dense<0.000000e+00> : vector<16x32xf32>
    %280 = tpu.matmul %277, %279, %cst_113 {dimension_numbers = #tpu.dot_dimension_numbers<[1], [0], [0], [1], [0, 0, 1, 1], [], []>} : vector<16x128xf32>, vector<128x32xf32>, vector<16x32xf32> -> vector<16x32xf32>
    %c1_114 = arith.constant 1 : index
    %c0_115 = arith.constant 0 : index
    %c0_116 = arith.constant 0 : index
    %281 = vector.load %arg15[%c1_114, %c0_115, %c0_116] : memref<2x1x32xf32, #tpu.memory_space<vmem>>, vector<1x1x32xf32>
    %282 = vector.shape_cast %281 : vector<1x1x32xf32> to vector<1x32xf32>
    %283 = vector.broadcast %282 : vector<1x32xf32> to vector<16x32xf32>
    %284 = arith.addf %280, %283 : vector<16x32xf32>
    %285 = arith.addf %231, %284 : vector<16x32xf32>
    %286 = vector.extract_strided_slice %285 {offsets = [0, 0], sizes = [1, 32], strides = [1, 1]} : vector<16x32xf32> to vector<1x32xf32>
    %287 = vector.extract_strided_slice %285 {offsets = [8, 0], sizes = [1, 32], strides = [1, 1]} : vector<16x32xf32> to vector<1x32xf32>
    %288 = tpu.concatenate %286, %287 in 0 : vector<1x32xf32>, vector<1x32xf32> -> vector<2x32xf32>
    %c0_117 = arith.constant 0 : index
    %c0_118 = arith.constant 0 : index
    %289 = vector.load %arg16[%c0_117, %c0_118] : memref<1x32xf32, #tpu.memory_space<vmem>>, vector<1x32xf32>
    %c0_119 = arith.constant 0 : index
    %c0_120 = arith.constant 0 : index
    %290 = vector.load %arg17[%c0_119, %c0_120] : memref<1x32xf32, #tpu.memory_space<vmem>>, vector<1x32xf32>
    %cst_121 = arith.constant dense<0.000000e+00> : vector<2xf32>
    %291 = vector.multi_reduction <add>, %288, %cst_121 [1] : vector<2x32xf32> to vector<2xf32>
    %292 = vector.shape_cast %291 : vector<2xf32> to vector<2x1xf32>
    %cst_122 = arith.constant 3.200000e+01 : f32
    %293 = vector.broadcast %cst_122 : f32 to vector<2x1xf32>
    %294 = arith.divf %292, %293 : vector<2x1xf32>
    %295 = vector.broadcast %294 : vector<2x1xf32> to vector<2x32xf32>
    %296 = arith.subf %288, %295 : vector<2x32xf32>
    %297 = arith.mulf %296, %296 : vector<2x32xf32>
    %cst_123 = arith.constant dense<0.000000e+00> : vector<2xf32>
    %298 = vector.multi_reduction <add>, %297, %cst_123 [1] : vector<2x32xf32> to vector<2xf32>
    %299 = vector.shape_cast %298 : vector<2xf32> to vector<2x1xf32>
    %cst_124 = arith.constant 3.200000e+01 : f32
    %300 = vector.broadcast %cst_124 : f32 to vector<2x1xf32>
    %301 = arith.divf %299, %300 : vector<2x1xf32>
    %302 = vector.broadcast %294 : vector<2x1xf32> to vector<2x32xf32>
    %303 = arith.subf %288, %302 : vector<2x32xf32>
    %cst_125 = arith.constant 9.99999974E-6 : f32
    %304 = vector.broadcast %cst_125 : f32 to vector<2x1xf32>
    %305 = arith.addf %301, %304 : vector<2x1xf32>
    %306 = math.rsqrt %305 : vector<2x1xf32>
    %307 = vector.broadcast %306 : vector<2x1xf32> to vector<2x32xf32>
    %308 = arith.mulf %303, %307 : vector<2x32xf32>
    %309 = vector.broadcast %289 : vector<1x32xf32> to vector<2x32xf32>
    %310 = arith.mulf %308, %309 : vector<2x32xf32>
    %311 = vector.broadcast %290 : vector<1x32xf32> to vector<2x32xf32>
    %312 = arith.addf %310, %311 : vector<2x32xf32>
    %c0_126 = arith.constant 0 : index
    %c0_127 = arith.constant 0 : index
    %313 = vector.load %arg18[%c0_126, %c0_127] : memref<2x32xf32, #tpu.memory_space<vmem>>, vector<2x32xf32>
    tpu.vector_store %arg18[%c0_126, %c0_127], %312 {strides = array<i32>} : memref<2x32xf32, #tpu.memory_space<vmem>>, vector<2x32xf32>,
    return
  }
  func.func @transform_0(%arg0: i32) -> (i32, i32) {
    %c0_i32 = arith.constant 0 : i32
    %c0_i32_0 = arith.constant 0 : i32
    return %arg0, %c0_i32 : i32, i32
  }
  func.func @transform_1(%arg0: i32) -> (i32, i32, i32) {
    %c0_i32 = arith.constant 0 : i32
    %c0_i32_0 = arith.constant 0 : i32
    %c0_i32_1 = arith.constant 0 : i32
    %c0_i32_2 = arith.constant 0 : i32
    return %c0_i32, %c0_i32_0, %c0_i32_1 : i32, i32, i32
  }
  func.func @transform_2(%arg0: i32) -> (i32, i32) {
    %c0_i32 = arith.constant 0 : i32
    %c0_i32_0 = arith.constant 0 : i32
    %c0_i32_1 = arith.constant 0 : i32
    return %c0_i32, %c0_i32_0 : i32, i32
  }
  func.func @transform_3(%arg0: i32) -> (i32, i32) {
    %c0_i32 = arith.constant 0 : i32
    %c0_i32_0 = arith.constant 0 : i32
    %c0_i32_1 = arith.constant 0 : i32
    return %c0_i32, %c0_i32_0 : i32, i32
  }
  func.func @transform_4(%arg0: i32) -> (i32, i32, i32) {
    %c0_i32 = arith.constant 0 : i32
    %c0_i32_0 = arith.constant 0 : i32
    %c0_i32_1 = arith.constant 0 : i32
    %c0_i32_2 = arith.constant 0 : i32
    return %c0_i32, %c0_i32_0, %c0_i32_1 : i32, i32, i32
  }
  func.func @transform_5(%arg0: i32) -> (i32, i32, i32) {
    %c0_i32 = arith.constant 0 : i32
    %c0_i32_0 = arith.constant 0 : i32
    %c0_i32_1 = arith.constant 0 : i32
    %c0_i32_2 = arith.constant 0 : i32
    return %c0_i32, %c0_i32_0, %c0_i32_1 : i32, i32, i32
  }
  func.func @transform_6(%arg0: i32) -> (i32, i32, i32) {
    %c0_i32 = arith.constant 0 : i32
    %c0_i32_0 = arith.constant 0 : i32
    %c0_i32_1 = arith.constant 0 : i32
    %c0_i32_2 = arith.constant 0 : i32
    return %c0_i32, %c0_i32_0, %c0_i32_1 : i32, i32, i32
  }
  func.func @transform_7(%arg0: i32) -> (i32, i32, i32) {
    %c0_i32 = arith.constant 0 : i32
    %c0_i32_0 = arith.constant 0 : i32
    %c0_i32_1 = arith.constant 0 : i32
    %c0_i32_2 = arith.constant 0 : i32
    return %c0_i32, %c0_i32_0, %c0_i32_1 : i32, i32, i32
  }
  func.func @transform_8(%arg0: i32) -> (i32, i32, i32) {
    %c0_i32 = arith.constant 0 : i32
    %c0_i32_0 = arith.constant 0 : i32
    %c0_i32_1 = arith.constant 0 : i32
    %c0_i32_2 = arith.constant 0 : i32
    return %c0_i32, %c0_i32_0, %c0_i32_1 : i32, i32, i32
  }
  func.func @transform_9(%arg0: i32) -> (i32, i32, i32) {
    %c0_i32 = arith.constant 0 : i32
    %c0_i32_0 = arith.constant 0 : i32
    %c0_i32_1 = arith.constant 0 : i32
    %c0_i32_2 = arith.constant 0 : i32
    return %c0_i32, %c0_i32_0, %c0_i32_1 : i32, i32, i32
  }
  func.func @transform_10(%arg0: i32) -> (i32, i32, i32) {
    %c0_i32 = arith.constant 0 : i32
    %c0_i32_0 = arith.constant 0 : i32
    %c0_i32_1 = arith.constant 0 : i32
    %c0_i32_2 = arith.constant 0 : i32
    return %c0_i32, %c0_i32_0, %c0_i32_1 : i32, i32, i32
  }
  func.func @transform_11(%arg0: i32) -> (i32, i32, i32) {
    %c0_i32 = arith.constant 0 : i32
    %c0_i32_0 = arith.constant 0 : i32
    %c0_i32_1 = arith.constant 0 : i32
    %c0_i32_2 = arith.constant 0 : i32
    return %c0_i32, %c0_i32_0, %c0_i32_1 : i32, i32, i32
  }
  func.func @transform_12(%arg0: i32) -> (i32, i32, i32) {
    %c0_i32 = arith.constant 0 : i32
    %c0_i32_0 = arith.constant 0 : i32
    %c0_i32_1 = arith.constant 0 : i32
    %c0_i32_2 = arith.constant 0 : i32
    return %c0_i32, %c0_i32_0, %c0_i32_1 : i32, i32, i32
  }
  func.func @transform_13(%arg0: i32) -> (i32, i32, i32) {
    %c0_i32 = arith.constant 0 : i32
    %c0_i32_0 = arith.constant 0 : i32
    %c0_i32_1 = arith.constant 0 : i32
    %c0_i32_2 = arith.constant 0 : i32
    return %c0_i32, %c0_i32_0, %c0_i32_1 : i32, i32, i32
  }
  func.func @transform_14(%arg0: i32) -> (i32, i32, i32) {
    %c0_i32 = arith.constant 0 : i32
    %c0_i32_0 = arith.constant 0 : i32
    %c0_i32_1 = arith.constant 0 : i32
    %c0_i32_2 = arith.constant 0 : i32
    return %c0_i32, %c0_i32_0, %c0_i32_1 : i32, i32, i32
  }
  func.func @transform_15(%arg0: i32) -> (i32, i32) {
    %c0_i32 = arith.constant 0 : i32
    %c0_i32_0 = arith.constant 0 : i32
    %c0_i32_1 = arith.constant 0 : i32
    return %c0_i32, %c0_i32_0 : i32, i32
  }
  func.func @transform_16(%arg0: i32) -> (i32, i32) {
    %c0_i32 = arith.constant 0 : i32
    %c0_i32_0 = arith.constant 0 : i32
    %c0_i32_1 = arith.constant 0 : i32
    return %c0_i32, %c0_i32_0 : i32, i32
  }
  func.func @transform_17(%arg0: i32) -> (i32, i32) {
    %c0_i32 = arith.constant 0 : i32
    %c0_i32_0 = arith.constant 0 : i32
    return %arg0, %c0_i32 : i32, i32
  }
}

</mosaic_0001>

<bundles_post_ra>
// kernel: vit_forward.1
= control target key start
LH: loop header
LB: loop body
LE: loop exit
PB: predicated region body
PF: predicated region fallthrough
CT: control target
= control target key end

     0   :  { %s2742_s0 = inlined_call_operand.vmem [shape: f32[16,192], index: 0, kind: input, shape index: {}]   ;;  %s2743_s1 = inlined_call_operand.vmem [shape: f32[4,16,16], index: 1, kind: input, shape index: {}]   ;;  %s2744_s2 = inlined_call_operand.vmem [shape: f32[192,32], index: 2, kind: input, shape index: {}]   ;;  %s2745_s3 = inlined_call_operand.vmem [shape: f32[16,32], index: 3, kind: input, shape index: {}]   ;;  %s2746_s4 = inlined_call_operand.vmem [shape: f32[2,1,32], index: 4, kind: input, shape index: {}]   ;;  %s2747_s5 = inlined_call_operand.vmem [shape: f32[2,1,32], index: 5, kind: input, shape index: {}]   ;;  %s2748_s6 = inlined_call_operand.vmem [shape: f32[2,32,96], index: 6, kind: input, shape index: {}]   ;;  %s2749_s7 = inlined_call_operand.vmem [shape: f32[2,32,32], index: 7, kind: input, shape index: {}]   ;;  %s2750_s8 = inlined_call_operand.vmem [shape: f32[2,1,32], index: 8, kind: input, shape index: {}]   ;;  %s2751_s9 = inlined_call_operand.vmem [shape: f32[2,1,32], index: 9, kind: input, shape index: {}]   ;;  %s2752_s10 = inlined_call_operand.vmem [shape: f32[2,1,32], index: 10, kind: input, shape index: {}]   ;;  %s2753_s11 = inlined_call_operand.vmem [shape: f32[2,32,128], index: 11, kind: input, shape index: {}]   ;;  %s2754_s12 = inlined_call_operand.vmem [shape: f32[2,1,128], index: 12, kind: input, shape index: {}]   ;;  %s2755_s13 = inlined_call_operand.vmem [shape: f32[2,128,32], index: 13, kind: input, shape index: {}]   ;;  %s2756_s14 = inlined_call_operand.vmem [shape: f32[2,1,32], index: 14, kind: input, shape index: {}]   ;;  %s2757_s15 = inlined_call_operand.vmem [shape: f32[1,32], index: 15, kind: input, shape index: {}]   ;;  %s2758_s16 = inlined_call_operand.vmem [shape: f32[1,32], index: 16, kind: input, shape index: {}]   ;;  %s2759_s17 = inlined_call_operand.hbm [shape: f32[2,32], index: 17, kind: output, shape index: {}]  }
   0x1   :  { %2764 = sst [smem:[#allocation5_spill]] %s2742_s0 }
   0x2   :  { %2765 = sst [smem:[#allocation6_spill]] %s2743_s1 }
   0x3   :  { %v76_v0 = vld [vmem:[%s2744_s2 + $0x78] sm:$0xff]  ;;  %v75_v1 = vld [vmem:[%s2744_s2 + $0x70] sm:$0xff]  ;;  %v74_v2 = vld [vmem:[%s2744_s2 + $0x68] sm:$0xff] }
   0x4   :  { %94 = vmatpush.msra.mxu0 %v76_v0  ;;  %v84_v3 = vld [vmem:[%s2744_s2 + $0xb8] sm:$0xff]  ;;  %v73_v4 = vld [vmem:[%s2744_s2 + $0x60] sm:$0xff]  ;;  %v83_v5 = vld [vmem:[%s2744_s2 + $0xb0] sm:$0xff] }
   0x5   :  { %125 = vmatpush.msra.mxu1 %v84_v3  ;;  %1714 = vmatpush.msra.mxu2 %v84_v3  ;;  %v82_v6 = vld [vmem:[%s2744_s2 + $0xa8] sm:$0xff]  ;;  %v72_v7 = vld [vmem:[%s2744_s2 + $0x58] sm:$0xff]  ;;  %v81_v8 = vld [vmem:[%s2744_s2 + $0xa0] sm:$0xff] }
   0x6   :  { %95 = vmatpush.msra.mxu0 %v75_v1  ;;  %v71_v9 = vld [vmem:[%s2744_s2 + $0x50] sm:$0xff]  ;;  %v70_v10 = vld [vmem:[%s2744_s2 + $0x48] sm:$0xff]  ;;  %v80_v11 = vld [vmem:[%s2744_s2 + $0x98] sm:$0xff] }
   0x7   :  { %126 = vmatpush.msra.mxu1 %v83_v5  ;;  %1715 = vmatpush.msra.mxu2 %v83_v5  ;;  %v79_v12 = vld [vmem:[%s2744_s2 + $0x90] sm:$0xff]  ;;  %v69_v13 = vld [vmem:[%s2744_s2 + $0x40] sm:$0xff]  ;;  %v78_v14 = vld [vmem:[%s2744_s2 + $0x88] sm:$0xff] }
   0x8   :  { %96 = vmatpush.msra.mxu0 %v74_v2  ;;  %v68_v15 = vld [vmem:[%s2744_s2 + $0x38] sm:$0xff] }
   0x9   :  { %127 = vmatpush.msra.mxu1 %v82_v6  ;;  %1716 = vmatpush.msra.mxu2 %v82_v6 }
   0xa   :  { %97 = vmatpush.msra.mxu0 %v73_v4 }
   0xb   :  { %128 = vmatpush.msra.mxu1 %v81_v8  ;;  %1717 = vmatpush.msra.mxu2 %v81_v8 }
   0xc   :  { %98 = vmatpush.msra.mxu0 %v72_v7 }
   0xd   :  { %129 = vmatpush.msra.mxu1 %v80_v11  ;;  %1718 = vmatpush.msra.mxu2 %v80_v11 }
   0xe   :  { %99 = vmatpush.msra.mxu0 %v71_v9 }
   0xf   :  { %130 = vmatpush.msra.mxu1 %v79_v12  ;;  %1719 = vmatpush.msra.mxu2 %v79_v12 }
  0x10   :  { %100 = vmatpush.msra.mxu0 %v70_v10 }
  0x11   :  { %22 = vsyncpa [#allocation3], 0  ;;  %v77_v16 = vld [vmem:[%s2744_s2 + $0x80] sm:$0xff]  ;;  %v67_v17 = vld [vmem:[%s2744_s2 + $0x30] sm:$0xff]  ;;  %131 = vmatpush.msra.mxu1 %v78_v14  ;;  %1720 = vmatpush.msra.mxu2 %v78_v14  ;;  %s2766_s18 = sld [smem:[#allocation5_spill]]  ;;  %vm87_vm0 = vcmask 523264  }
  0x12   :  { %101 = vmatpush.msra.mxu0 %v69_v13  ;;  %v66_v20 = vld [vmem:[%s2744_s2 + $0x28] sm:$0xff]  ;;  %v65_v21 = vld [vmem:[%s2744_s2 + $0x20] sm:$0xff]  ;;  %v64_v22 = vld [vmem:[%s2744_s2 + $0x18] sm:$0xff]  ;;  %vm150_vm1 = vcmask 261120   ;;  %v1908_v40 = vmov 32.0   ;;  %s1909_s21 = smov 120  }
  0x13   :  { %132 = vmatpush.msra.mxu1 %v77_v16  ;;  %1721 = vmatpush.msra.mxu2 %v77_v16  ;;  %v63_v23 = vld [vmem:[%s2744_s2 + $0x10] sm:$0xff]  ;;  %v62_v24 = vld [vmem:[%s2744_s2 + $0x8] sm:$0xff]  ;;  %v61_v25 = vld [vmem:[%s2744_s2] sm:$0xff]  ;;  %1790 = vrcp.f32 %v1908_v40  ;;  %s1910_s22 = smov 112   ;;  %s1911_s23 = smov 96   ;;  %vm263_vm9 = vcmask 64512  }
  0x14   :  { %102 = vmatpush.msra.mxu0 %v68_v15  ;;  %v85_v28 = vld [vmem:[%s2745_s3] sm:$0xff]  ;;  %v86_v34 = vld [vmem:[%s2745_s3 + $0x8] sm:$0xff]  ;;  %v215_v57 = vld [vmem:[%s2748_s6 + $0x18] sm:$0xff]  ;;  %s1912_s2 = smov 104   ;;  %vm400_vm10 = vcmask 130048   ;;  %s2762_s27 = smov 8  }
  0x15   :  { %234 = vmatpush.msrb.mxu2 %v215_v57  ;;  %v214_v58 = vld [vmem:[%s2748_s6 + $0x10] sm:$0xff]  ;;  %v213_v59 = vld [vmem:[%s2748_s6 + $0x8] sm:$0xff]  ;;  %v212_v60 = vld [vmem:[%s2748_s6] sm:$0xff]  ;;  %s1915_s28 = smov 16   ;;  %s1916_s29 = smov 24   ;;  %vm657_vm11 = vcmask 195584  }
  0x16   :  { %103 = vmatpush.msra.mxu0 %v67_v17  ;;  %v1774_v11 = vld [vmem:[%s2746_s4] ss:$0 sm:$0xff]  ;;  %s1608_s24 = sshll.u32 %s2759_s17, 4  ;;  %s1609_s24 = int_to_ptr.hbm [resolvable:$true] %s1608_s24 }
  0x17   :  { %v58_v18 = vld [vmem:[%s2766_s18 + $0x8] sm:$0xff]  ;;  %v60_v19 = vld [vmem:[%s2766_s18 + $0x18] sm:$0xff]  ;;  %v57_v26 = vld [vmem:[%s2766_s18] sm:$0xff]  ;;  %235 = vmatpush.msrb.mxu2 %v214_v58 }
  0x18   :  { %1617 = vmatmul.msk.f32.vlgmr.msra.gmra.mxu1 %vm87_vm0, %v58_v18  ;;  %1618 = vmatmul.msk.f32.vlgmr.msra.gmra.mxu2 %vm87_vm0, %v60_v19  ;;  %v59_v27 = vld [vmem:[%s2766_s18 + $0x10] sm:$0xff]  ;;  %v1775_v15 = vld [vmem:[%s2747_s5] ss:$0 sm:$0xff]  ;;  %s2767_s18 = sld [smem:[#allocation6_spill]] }
  0x19   :  { %104 = vmatpush.msra.mxu0 %v66_v20  ;;  %v1791_v41 = vpop.eup %1790  ;;  %236 = vmatpush.msrb.mxu2 %v213_v59 }
  0x1a   :  { %v158_v42 = vmul.f32 32.0, %v1791_v41  ;;  %vm162_vm2 = vweird.f32 %v1791_v41 }
  0x1b   :  { %105 = vmatpush.msra.mxu0 %v65_v21  ;;  %237 = vmatpush.msrb.mxu2 %v212_v60 }
  0x1c   :  { %v159_v43 = vsub.f32 1.0, %v158_v42 }
  0x1d   :  { %106 = vmatpush.msra.mxu0 %v64_v22 }
  0x1e   :  { %v160_v44 = vmul.f32 %v1791_v41, %v159_v43  ;;  %v2241_v60 = vld [vmem:[%s2767_s18 + $0x18] sm:$0xff] }
  0x1f   :  { %107 = vmatpush.msra.mxu0 %v63_v23 }
  0x20   :  { %v161_v45 = vadd.f32 %v1791_v41, %v160_v44 }
  0x21   :  { %108 = vmatpush.msra.mxu0 %v62_v24 }
  0x22   :  { %v2106_v46 = vsel %vm162_vm2, %v1791_v41, %v161_v45  ;;  %v2209_v45 = vld [vmem:[%s2767_s18 + $0x20] sm:$0xff] }
  0x23   :  { %109 = vmatpush.msra.mxu0 %v61_v25 }
  0x24   :  { %110 = vmatmul.f32.vlgmr.msra.gmra.mxu0 %v57_v26 }
  0x2c   :  { %113 = vmatmul.f32.gmra.mxu0 %v59_v27 }
  0x95   :  { %v134_v30 = vpop.f32.mrf.mxu1 }
  0x9b   :  { %v137_v36 = vpop.f32.mrf.mxu2 }
  0xa1   :  { %v111_v29 = vpop.f32.mrf.mxu0 }
  0xa2   :  { %v112_v31 = vadd.f32 %v111_v29, %v85_v28 }
  0xa4   :  { %v2095_v32 = vadd.f32 %v134_v30, %v112_v31 }
  0xa6   :  { %v151_v33 = vsel %vm150_vm1, %v2095_v32, 0.0 }
  0xa7   :  { %152 = vadd.xlane.f32.xlu0 %v151_v33 }
  0xa9   :  { %v114_v35 = vpop.f32.mrf.mxu0 }
  0xaa   :  { %v115_v37 = vadd.f32 %v114_v35, %v86_v34 }
  0xac   :  { %v2102_v38 = vadd.f32 %v137_v36, %v115_v37 }
  0xae   :  { %v154_v39 = vsel %vm150_vm1, %v2102_v38, 0.0 }
  0xaf   :  { %155 = vadd.xlane.f32.xlu0 %v154_v39 }
 0x11a   :  { %v153_v47 = vpop.xlane.xlu0 %152 }
 0x11b   :  { %v164_v48 = vmul.f32 %v2106_v46, %v153_v47 }
 0x11d   :  { %v166_v49 = vsub.f32 %v2095_v32, %v164_v48 }
 0x11f   :  { %v168_v50 = vmul.f32 %v166_v49, %v166_v49 }
 0x121   :  { %v170_v51 = vsel %vm150_vm1, %v168_v50, 0.0  ;;  %v2219_v50 = vld [vmem:[%s2767_s18 + $0x10] sm:$0xff] }
 0x122   :  { %171 = vadd.xlane.f32.xlu1 %v170_v51  ;;  %v156_v52 = vpop.xlane.xlu0 %155 }
 0x123   :  { %v165_v53 = vmul.f32 %v2106_v46, %v156_v52 }
 0x125   :  { %v167_v54 = vsub.f32 %v2102_v38, %v165_v53  ;;  %v2225_v53 = vld [vmem:[%s2767_s18 + $0x28] sm:$0xff] }
 0x127   :  { %v169_v55 = vmul.f32 %v167_v54, %v167_v54 }
 0x129   :  { %v173_v56 = vsel %vm150_vm1, %v169_v55, 0.0 }
 0x12a   :  { %174 = vadd.xlane.f32.xlu1 %v173_v56  ;;  %v2231_v56 = vld [vmem:[%s2767_s18 + $0x30] sm:$0xff] }
 0x195   :  { %v172_v61 = vpop.xlane.xlu1 %171 }
 0x196   :  { %v176_v62 = vmul.f32 %v172_v61, %v2106_v46  ;;  %v2246_v61 = vld [vmem:[%s2767_s18 + $0x8] sm:$0xff] }
 0x198   :  { %v178_v63 = vadd.f32 1e-05, %v176_v62 }
 0x19a   :  { %1792 = vrsqrt.f32 %v178_v63  ;;  %vm186_vm4 = vweird.f32 %v178_v63 }
 0x19d   :  { %v175_v0 = vpop.xlane.xlu1 %174 }
 0x19e   :  { %v177_v1 = vmul.f32 %v175_v0, %v2106_v46 }
 0x1a0   :  { %v1793_v2 = vpop.eup %1792  ;;  %v179_v3 = vadd.f32 1e-05, %v177_v1 }
 0x1a1   :  { %v181_v4 = vmul.f32 %v1793_v2, %v178_v63  ;;  %vm187_vm3 = vweird.f32 %v1793_v2 }
 0x1a2   :  { %1794 = vrsqrt.f32 %v179_v3  ;;  %vm188_vm5 = vmor %vm186_vm4, %vm187_vm3  ;;  %vm196_vm7 = vweird.f32 %v179_v3 }
 0x1a3   :  { %v182_v5 = vmul.f32 %v1793_v2, %v181_v4  ;;  %v2256_v4 = vld [vmem:[%s2767_s18] sm:$0xff] }
 0x1a5   :  { %v183_v6 = vmul.f32 0.5, %v182_v5  ;;  %v2261_v5 = vld [vmem:[%s2767_s18 + $0x38] sm:$0xff]  ;;  %s1913_s18 = smov 64  }
 0x1a7   :  { %v184_v7 = vsub.f32 1.5, %v183_v6 }
 0x1a8   :  { %v1795_v8 = vpop.eup %1794 }
 0x1a9   :  { %v185_v9 = vmul.f32 %v1793_v2, %v184_v7  ;;  %v191_v10 = vmul.f32 %v1795_v8, %v179_v3  ;;  %vm197_vm6 = vweird.f32 %v1795_v8 }
 0x1aa   :  { %vm198_vm8 = vmor %vm196_vm7, %vm197_vm6 }
 0x1ab   :  { %v189_v12 = vsel %vm188_vm5, %v1793_v2, %v185_v9  ;;  %v192_v13 = vmul.f32 %v1795_v8, %v191_v10 }
 0x1ac   :  { %v200_v14 = vmul.f32 %v189_v12, %v166_v49 }
 0x1ad   :  { %v193_v16 = vmul.f32 0.5, %v192_v13 }
 0x1ae   :  { %v205_v17 = vmul.f32 %v1774_v11, %v200_v14 }
 0x1af   :  { %v194_v18 = vsub.f32 1.5, %v193_v16 }
 0x1b0   :  { %v210_v19 = vadd.f32 %v1775_v15, %v205_v17 }
 0x1b1   :  { %v195_v20 = vmul.f32 %v1795_v8, %v194_v18 }
 0x1b2   :  { %1619 = vmatmul.msk.f32.vlgmr.msrb.gmra.mxu2 %vm150_vm1, %v210_v19 }
 0x1b3   :  { %v199_v21 = vsel %vm198_vm8, %v1795_v8, %v195_v20 }
 0x1b4   :  { %v201_v22 = vmul.f32 %v199_v21, %v167_v54 }
 0x1b6   :  { %v206_v23 = vmul.f32 %v1774_v11, %v201_v22 }
 0x1b8   :  { %v211_v24 = vadd.f32 %v1775_v15, %v206_v23 }
 0x1ba   :  { %1620 = vmatmul.msk.f32.gmra.mxu2 %vm150_vm1, %v211_v24 }
 0x235   :  { %v2136_v25 = vpop.f32.mrf.mxu2 }
 0x236   :  { %247 = vrot.lane.b32.xlu0 %v2136_v25, %s1909_s21  ;;  %251 = vrot.lane.b32.xlu1 %v2136_v25, %s1910_s22 }
 0x23d   :  { %v2142_v26 = vpop.f32.mrf.mxu2 }
 0x23e   :  { %259 = vrot.lane.b32.xlu0 %v2136_v25, %s1911_s23  ;;  %249 = vrot.lane.b32.xlu2 %v2142_v26, %s1909_s21 }
 0x246   :  { %253 = vrot.lane.b32.xlu2 %v2142_v26, %s1910_s22 }
 0x24e   :  { %257 = vrot.lane.b32.xlu2 %v2142_v26, %s1912_s2 }
 0x256   :  { %255 = vrot.lane.b32.xlu2 %v2136_v25, %s1912_s2 }
 0x25e   :  { %261 = vrot.lane.b32.xlu2 %v2142_v26, %s1911_s23 }
 0x298   :  { %v2156_v27 = vpop.permute.xlu2 %249 }
 0x299   :  { %297 = vrot.lane.b32.xlu2 %v2156_v27, %s1911_s23 }
 0x2a0   :  { %v2160_v28 = vpop.permute.xlu2 %253 }
 0x2a1   :  { %332 = vrot.lane.b32.xlu1 %v2160_v28, %s1911_s23 }
 0x2a8   :  { %v2164_v29 = vpop.permute.xlu2 %257  ;;  %v2166_v30 = vpop.permute.xlu1 %251 }
 0x2a9   :  { %v2168_v31 = vpop.permute.xlu0 %247  ;;  %367 = vrot.lane.b32.xlu1 %v2164_v29, %s1911_s23  ;;  %330 = vrot.lane.b32.xlu2 %v2166_v30, %s1911_s23  ;;  %v1739_v12 = vpack.i.bf16 %v2164_v29, %v2160_v28 }
 0x2aa   :  { %295 = vrot.lane.b32.xlu0 %v2168_v31, %s1911_s23  ;;  %v1734_v13 = vpack.i.bf16 %v2168_v31, %v2156_v27 }
 0x2b0   :  { %v2176_v33 = vpop.permute.xlu2 %255 }
 0x2b1   :  { %v260_v35 = vpop.permute.xlu0 %259  ;;  %v1744_v14 = vpack.i.bf16 %v2176_v33, %v2166_v30 }
 0x2b2   :  { %365 = vrot.lane.b32.xlu0 %v2176_v33, %s1911_s23 }
 0x2b8   :  { %v262_v34 = vpop.permute.xlu2 %261 }
 0x2b9   :  { %1621 = vmatpush.xpose.msk.msra.mxu3 %vm263_vm9, %v262_v34 }
 0x2bd   :  { %1622 = vmatpush.xpose.msk.msra.mxu3 %vm263_vm9, %v260_v35 }
 0x2c0   :  { %1623 = vmatmul.msk.f32.vlgmr.msra.gmra.mxu3 %vm263_vm9, %v2136_v25 }
 0x2c8   :  { %1624 = vmatmul.msk.f32.gmra.mxu3 %vm263_vm9, %v2142_v26 }
 0x2f3   :  { %v298_v36 = vpop.permute.xlu2 %297 }
 0x2f4   :  { %1625 = vmatpush.xpose.msk.msra.mxu2 %vm263_vm9, %v298_v36 }
 0x303   :  { %v331_v39 = vpop.permute.xlu2 %330 }
 0x313   :  { %v333_v37 = vpop.permute.xlu1 %332 }
 0x314   :  { %1629 = vmatpush.xpose.msk.msrb.mxu3 %vm263_vm9, %v333_v37 }
 0x318   :  { %1630 = vmatpush.xpose.msk.msrb.mxu3 %vm263_vm9, %v331_v39 }
 0x31b   :  { %v368_v40 = vpop.permute.xlu1 %367  ;;  %1631 = vmatmul.msk.f32.vlgmr.msrb.gmra.mxu3 %vm263_vm9, %v2166_v30 }
 0x31c   :  { %v296_v41 = vpop.permute.xlu0 %295  ;;  %1633 = vmatpush.xpose.msk.msrb.mxu1 %vm263_vm9, %v368_v40  ;;  %1722 = vmatpush.xpose.msk.msra.mxu3 %vm263_vm9, %v368_v40 }
 0x31d   :  { %1626 = vmatpush.xpose.msk.msra.mxu2 %vm263_vm9, %v296_v41 }
 0x320   :  { %1627 = vmatmul.msk.f32.vlgmr.msra.gmra.mxu2 %vm263_vm9, %v2168_v31 }
 0x323   :  { %1632 = vmatmul.msk.f32.gmra.mxu3 %vm263_vm9, %v2160_v28 }
 0x324   :  { %v366_v42 = vpop.permute.xlu0 %365 }
 0x325   :  { %1634 = vmatpush.xpose.msk.msrb.mxu1 %vm263_vm9, %v366_v42  ;;  %1723 = vmatpush.xpose.msk.msra.mxu3 %vm263_vm9, %v366_v42 }
 0x328   :  { %1628 = vmatmul.msk.f32.gmra.mxu2 %vm263_vm9, %v2156_v27  ;;  %1635 = vmatmul.msk.f32.vlgmr.msrb.gmra.mxu1 %vm263_vm9, %v2176_v33 }
 0x32b   :  { %1636 = vmatmul.msk.f32.vlgmr.msra.gmra.mxu3 %vm263_vm9, %v2164_v29 }
 0x343   :  { %v289_v43 = vpop.f32.mrf.mxu3 }
 0x344   :  { %v2265_v8 = vadd.f32 %v289_v43, %v2256_v4 }
 0x346   :  { %v401_v11 = vsel %vm400_vm10, %v2265_v8, -inf }
 0x34b   :  { %v292_v44 = vpop.f32.mrf.mxu3 }
 0x34c   :  { %v293_v1 = vadd.f32 %v292_v44, %v2246_v61 }
 0x34e   :  { %v404_v7 = vsel %vm400_vm10, %v293_v1, -inf }
 0x39e   :  { %v359_v47 = vpop.f32.mrf.mxu3 }
 0x39f   :  { %v2212_v48 = vadd.f32 %v359_v47, %v2209_v45 }
 0x3a1   :  { %v413_v49 = vsel %vm400_vm10, %v2212_v48, -inf }
 0x3a2   :  { %414 = vmax.xlane.f32.xlu1 %v413_v49 }
 0x3a3   :  { %v324_v51 = vpop.f32.mrf.mxu2 }
 0x3a4   :  { %v325_v52 = vadd.f32 %v324_v51, %v2219_v50 }
 0x3a5   :  { %v394_v57 = vpop.f32.mrf.mxu1 }
 0x3a6   :  { %v362_v54 = vpop.f32.mrf.mxu3  ;;  %v407_v55 = vsel %vm400_vm10, %v325_v52, -inf  ;;  %v395_v62 = vadd.f32 %v394_v57, %v2231_v56 }
 0x3a7   :  { %v2234_v58 = vadd.f32 %v362_v54, %v2225_v53  ;;  %408 = vmax.xlane.f32.xlu2 %v407_v55 }
 0x3a8   :  { %v419_v3 = vsel %vm400_vm10, %v395_v62, -inf }
 0x3a9   :  { %v416_v59 = vsel %vm400_vm10, %v2234_v58, -inf }
 0x3aa   :  { %417 = vmax.xlane.f32.xlu1 %v416_v59 }
 0x3ab   :  { %v327_v63 = vpop.f32.mrf.mxu2 }
 0x3ac   :  { %v328_v0 = vadd.f32 %v327_v63, %v2241_v60 }
 0x3ae   :  { %v410_v2 = vsel %vm400_vm10, %v328_v0, -inf  ;;  %v397_v6 = vpop.f32.mrf.mxu3 }
 0x3af   :  { %411 = vmax.xlane.f32.xlu0 %v410_v2  ;;  %420 = vmax.xlane.f32.xlu2 %v419_v3  ;;  %v398_v9 = vadd.f32 %v397_v6, %v2261_v5  ;;  %v1749_v6 = vpack.i.bf16 %v2136_v25, %v2142_v26 }
 0x3b1   :  { %v422_v10 = vsel %vm400_vm10, %v398_v9, -inf }
 0x3b2   :  { %405 = vmax.xlane.f32.xlu1 %v404_v7 }
 0x3b7   :  { %423 = vmax.xlane.f32.xlu0 %v422_v10  ;;  %402 = vmax.xlane.f32.xlu2 %v401_v11 }
 0x3cb   :  { %1740 = vrot.lane.b32.xlu0 %v1739_v12, %s1913_s18  ;;  %1735 = vrot.lane.b32.xlu1 %v1734_v13, %s1913_s18 }
 0x3d3   :  { %1745 = vrot.lane.b32.xlu1 %v1744_v14, %s1913_s18 }
 0x415   :  { %v415_v15 = vpop.xlane.xlu1 %414 }
 0x416   :  { %v429_v27 = vsub.f32 %v2212_v48, %v415_v15 }
 0x418   :  { %v441_v35 = vmul.f32 1.442695, %v429_v27 }
 0x41a   :  { %v409_v16 = vpop.xlane.xlu2 %408 }
 0x41b   :  { %v427_v17 = vsub.f32 %v325_v52, %v409_v16 }
 0x41d   :  { %v437_v18 = vmul.f32 1.442695, %v427_v17  ;;  %v418_v19 = vpop.xlane.xlu1 %417 }
 0x41e   :  { %v430_v37 = vsub.f32 %v2234_v58, %v418_v19 }
 0x41f   :  { %1796 = vpow2.f32 %v437_v18 }
 0x420   :  { %v443_v43 = vmul.f32 1.442695, %v430_v37 }
 0x422   :  { %v421_v20 = vpop.xlane.xlu2 %420  ;;  %v412_v21 = vpop.xlane.xlu0 %411 }
 0x423   :  { %v431_v22 = vsub.f32 %v395_v62, %v421_v20  ;;  %v428_v23 = vsub.f32 %v328_v0, %v412_v21 }
 0x425   :  { %v2280_v24 = vpop.eup %1796  ;;  %v445_v28 = vmul.f32 1.442695, %v431_v22  ;;  %v439_v29 = vmul.f32 1.442695, %v428_v23  ;;  %v406_v31 = vpop.xlane.xlu1 %405 }
 0x426   :  { %v426_v30 = vsub.f32 %v293_v1, %v406_v31  ;;  %v455_v33 = vsel %vm400_vm10, %v2280_v24, 0.0 }
 0x427   :  { %1798 = vpow2.f32 %v445_v28  ;;  %456 = vadd.xlane.f32.xlu0 %v455_v33 }
 0x428   :  { %1800 = vpow2.f32 %v439_v29  ;;  %v435_v34 = vmul.f32 1.442695, %v426_v30 }
 0x42a   :  { %1802 = vpow2.f32 %v435_v34  ;;  %v424_v47 = vpop.xlane.xlu0 %423  ;;  %v403_v54 = vpop.xlane.xlu2 %402 }
 0x42b   :  { %1804 = vpow2.f32 %v441_v35  ;;  %v432_v49 = vsub.f32 %v398_v9, %v424_v47  ;;  %v425_v57 = vsub.f32 %v2265_v8, %v403_v54  ;;  %v662_v54 = vld [vmem:[%s2749_s7 + $0x10] sm:$0xff] }
 0x42c   :  { %1806 = vpow2.f32 %v443_v43 }
 0x42d   :  { %v1799_v36 = vpop.eup %1798  ;;  %v447_v52 = vmul.f32 1.442695, %v432_v49  ;;  %v433_v2 = vmul.f32 1.442695, %v425_v57  ;;  %v660_v57 = vld [vmem:[%s2749_s7] sm:$0xff] }
 0x42e   :  { %v1801_v39 = vpop.eup %1800  ;;  %v467_v40 = vsel %vm400_vm10, %v1799_v36, 0.0 }
 0x42f   :  { %468 = vadd.xlane.f32.xlu2 %v467_v40  ;;  %v458_v41 = vsel %vm400_vm10, %v1801_v39, 0.0  ;;  %1808 = vpow2.f32 %v447_v52  ;;  %v663_v52 = vld [vmem:[%s2749_s7 + $0x18] sm:$0xff] }
 0x430   :  { %v2288_v42 = vpop.eup %1802  ;;  %459 = vadd.xlane.f32.xlu0 %v458_v41  ;;  %1810 = vpow2.f32 %v433_v2 }
 0x431   :  { %v452_v44 = vsel %vm400_vm10, %v2288_v42, 0.0  ;;  %v1805_v48 = vpop.eup %1804 }
 0x432   :  { %453 = vadd.xlane.f32.xlu1 %v452_v44  ;;  %v461_v51 = vsel %vm400_vm10, %v1805_v48, 0.0  ;;  %v1807_v55 = vpop.eup %1806 }
 0x433   :  { %v464_v0 = vsel %vm400_vm10, %v1807_v55, 0.0 }
 0x435   :  { %v1809_v7 = vpop.eup %1808 }
 0x436   :  { %v470_v10 = vsel %vm400_vm10, %v1809_v7, 0.0  ;;  %v1811_v12 = vpop.eup %1810 }
 0x437   :  { %462 = vadd.xlane.f32.xlu2 %v461_v51  ;;  %v449_v13 = vsel %vm400_vm10, %v1811_v12, 0.0 }
 0x43d   :  { %v1741_v58 = vpop.permute.xlu0 %1740  ;;  %v1736_v59 = vpop.permute.xlu1 %1735 }
 0x43e   :  { %v1743_v62 = vunpack.i.h.bf16 %v1741_v58  ;;  %v1737_v63 = vunpack.i.l.bf16 %v1736_v59  ;;  %v1742_v1 = vunpack.i.l.bf16 %v1741_v58  ;;  %v1738_v3 = vunpack.i.h.bf16 %v1736_v59 }
 0x43f   :  { %465 = vadd.xlane.f32.xlu2 %v464_v0 }
 0x440   :  { %585 = vmatpush.msrb.mxu0 %v1742_v1  ;;  %620 = vmatpush.msra.mxu1 %v1743_v62 }
 0x441   :  { %550 = vmatpush.msrb.mxu3 %v1737_v63 }
 0x443   :  { %551 = vmatpush.msrb.mxu3 %v1738_v3 }
 0x444   :  { %1750 = vrot.lane.b32.xlu0 %v1749_v6, %s1913_s18 }
 0x445   :  { %v1746_v8 = vpop.permute.xlu1 %1745 }
 0x446   :  { %v1748_v9 = vunpack.i.h.bf16 %v1746_v8  ;;  %v1747_v11 = vunpack.i.l.bf16 %v1746_v8 }
 0x447   :  { %471 = vadd.xlane.f32.xlu2 %v470_v10 }
 0x448   :  { %586 = vmatpush.msrb.mxu0 %v1747_v11  ;;  %621 = vmatpush.msra.mxu1 %v1748_v9 }
 0x44f   :  { %450 = vadd.xlane.f32.xlu2 %v449_v13 }
 0x49a   :  { %v457_v14 = vpop.xlane.xlu0 %456 }
 0x49b   :  { %1812 = vrcp.f32 %v457_v14 }
 0x4a1   :  { %v1813_v25 = vpop.eup %1812 }
 0x4a2   :  { %v483_v26 = vmul.f32 %v1813_v25, %v2280_v24  ;;  %v469_v15 = vpop.xlane.xlu2 %468 }
 0x4a3   :  { %1814 = vrcp.f32 %v469_v15  ;;  %v460_v16 = vpop.xlane.xlu0 %459 }
 0x4a4   :  { %1816 = vrcp.f32 %v460_v16  ;;  %1639 = vmatmul.msk.f32.vlgmr.msrb.gmra.mxu3 %vm400_vm10, %v483_v26 }
 0x4a5   :  { %v454_v37 = vpop.xlane.xlu1 %453 }
 0x4a9   :  { %v1815_v17 = vpop.eup %1814 }
 0x4aa   :  { %v1817_v18 = vpop.eup %1816  ;;  %v487_v19 = vmul.f32 %v1815_v17, %v1799_v36  ;;  %v463_v20 = vpop.xlane.xlu2 %462 }
 0x4ab   :  { %1818 = vrcp.f32 %v463_v20  ;;  %v484_v21 = vmul.f32 %v1817_v18, %v1801_v39 }
 0x4ac   :  { %1643 = vmatmul.msk.f32.vlgmr.msra.gmra.mxu1 %vm400_vm10, %v487_v19 }
 0x4ad   :  { %1640 = vmatmul.msk.f32.gmra.mxu3 %vm400_vm10, %v484_v21 }
 0x4b1   :  { %v1819_v22 = vpop.eup %1818 }
 0x4b2   :  { %v466_v23 = vpop.xlane.xlu2 %465  ;;  %v485_v27 = vmul.f32 %v1819_v22, %v1805_v48 }
 0x4b3   :  { %1820 = vrcp.f32 %v466_v23 }
 0x4b4   :  { %1641 = vmatmul.msk.f32.vlgmr.msrb.gmra.mxu0 %vm400_vm10, %v485_v27 }
 0x4b6   :  { %v1751_v24 = vpop.permute.xlu0 %1750 }
 0x4b7   :  { %v1752_v28 = vunpack.i.l.bf16 %v1751_v24  ;;  %v1753_v31 = vunpack.i.h.bf16 %v1751_v24 }
 0x4b9   :  { %v1821_v29 = vpop.eup %1820  ;;  %515 = vmatpush.msrb.mxu2 %v1752_v28 }
 0x4ba   :  { %v472_v30 = vpop.xlane.xlu2 %471  ;;  %v486_v33 = vmul.f32 %v1821_v29, %v1807_v55  ;;  %v661_v55 = vld [vmem:[%s2749_s7 + $0x8] sm:$0xff]  ;;  %v758_v29 = vld [vmem:[%s2753_s11 + $0x18] sm:$0xff] }
 0x4bb   :  { %1822 = vrcp.f32 %v472_v30  ;;  %516 = vmatpush.msrb.mxu2 %v1753_v31  ;;  %781 = vmatpush.msra.mxu3 %v758_v29  ;;  %v757_v31 = vld [vmem:[%s2753_s11 + $0x10] sm:$0xff]  ;;  %v756_v30 = vld [vmem:[%s2753_s11 + $0x8] sm:$0xff] }
 0x4bc   :  { %1642 = vmatmul.msk.f32.gmra.mxu0 %vm400_vm10, %v486_v33  ;;  %v755_v33 = vld [vmem:[%s2753_s11] sm:$0xff] }
 0x4bd   :  { %686 = vmatpush.msra.mxu2 %v663_v52  ;;  %782 = vmatpush.msra.mxu3 %v757_v31 }
 0x4bf   :  { %687 = vmatpush.msra.mxu2 %v662_v54  ;;  %783 = vmatpush.msra.mxu3 %v756_v30 }
 0x4c1   :  { %v1823_v34 = vpop.eup %1822  ;;  %688 = vmatpush.msra.mxu2 %v661_v55  ;;  %784 = vmatpush.msra.mxu3 %v755_v33  ;;  %v1777_v55 = vld [vmem:[%s2751_s9] ss:$0 sm:$0xff] }
 0x4c2   :  { %v451_v35 = vpop.xlane.xlu2 %450  ;;  %v488_v36 = vmul.f32 %v1823_v34, %v1809_v7 }
 0x4c3   :  { %1824 = vrcp.f32 %v451_v35  ;;  %689 = vmatpush.msra.mxu2 %v660_v57 }
 0x4c4   :  { %1644 = vmatmul.msk.f32.gmra.mxu1 %vm400_vm10, %v488_v36  ;;  %1826 = vrcp.f32 %v454_v37 }
 0x4c9   :  { %v1825_v39 = vpop.eup %1824 }
 0x4ca   :  { %v481_v40 = vmul.f32 %v1825_v39, %v1811_v12  ;;  %v1827_v41 = vpop.eup %1826  ;;  %v1776_v12 = vld [vmem:[%s2750_s8] ss:$0 sm:$0xff] }
 0x4cb   :  { %v482_v43 = vmul.f32 %v1827_v41, %v2288_v42  ;;  %v824_v41 = vld [vmem:[%s2755_s13 + $0x70] sm:$0xff] }
 0x4cc   :  { %1637 = vmatmul.msk.f32.vlgmr.msrb.gmra.mxu2 %vm400_vm10, %v481_v40  ;;  %v825_v40 = vld [vmem:[%s2755_s13 + $0x78] sm:$0xff] }
 0x4cd   :  { %830 = vmatpush.msra.mxu0 %v825_v40 }
 0x4cf   :  { %831 = vmatpush.msra.mxu0 %v824_v41 }
 0x4d4   :  { %1638 = vmatmul.msk.f32.gmra.mxu2 %vm400_vm10, %v482_v43 }
 0x527   :  { %v553_v44 = vpop.f32.mrf.mxu3 }
 0x528   :  { %631 = vrot.lane.b32.xlu2 %v553_v44, %s2762_s27  ;;  %v823_v44 = vld [vmem:[%s2755_s13 + $0x68] sm:$0xff] }
 0x529   :  { %v623_v48 = vpop.f32.mrf.mxu1  ;;  %832 = vmatpush.msra.mxu0 %v823_v44 }
 0x530   :  { %v556_v51 = vpop.f32.mrf.mxu3 }
 0x531   :  { %v588_v47 = vpop.f32.mrf.mxu0 }
 0x532   :  { %639 = vrot.lane.b32.xlu0 %v588_v47, %s1915_s28 }
 0x539   :  { %v591_v49 = vpop.f32.mrf.mxu0 }
 0x53a   :  { %647 = vrot.lane.b32.xlu0 %v623_v48, %s1916_s29  ;;  %641 = vrot.lane.b32.xlu2 %v591_v49, %s1915_s28 }
 0x541   :  { %v626_v42 = vpop.f32.mrf.mxu1 }
 0x542   :  { %633 = vrot.lane.b32.xlu0 %v556_v51, %s2762_s27  ;;  %v822_v51 = vld [vmem:[%s2755_s13 + $0x60] sm:$0xff] }
 0x543   :  { %833 = vmatpush.msra.mxu0 %v822_v51 }
 0x54a   :  { %649 = vrot.lane.b32.xlu0 %v626_v42, %s1916_s29 }
 0x54f   :  { %v518_v62 = vpop.f32.mrf.mxu2 }
 0x557   :  { %v521_v6 = vpop.f32.mrf.mxu2 }
 0x582   :  { %v632_v59 = vpop.permute.xlu2 %631 }
 0x583   :  { %v653_v63 = vsel %vm263_vm9, %v518_v62, %v632_v59  ;;  %v1778_v59 = vld [vmem:[%s2752_s10] ss:$0 sm:$0xff] }
 0x594   :  { %v642_v8 = vpop.permute.xlu2 %641 }
 0x5a4   :  { %v640_v58 = vpop.permute.xlu0 %639 }
 0x5a5   :  { %v655_v0 = vsel %vm400_vm10, %v653_v63, %v640_v58 }
 0x5ac   :  { %v648_v1 = vpop.permute.xlu0 %647 }
 0x5ad   :  { %v658_v2 = vsel %vm657_vm11, %v655_v0, %v648_v1 }
 0x5ae   :  { %1645 = vmatmul.msk.f32.vlgmr.msra.gmra.mxu2 %vm150_vm1, %v658_v2 }
 0x5b4   :  { %v634_v3 = vpop.permute.xlu0 %633 }
 0x5b5   :  { %v654_v7 = vsel %vm263_vm9, %v521_v6, %v634_v3 }
 0x5b6   :  { %v656_v10 = vsel %vm400_vm10, %v654_v7, %v642_v8 }
 0x5bc   :  { %v650_v9 = vpop.permute.xlu0 %649 }
 0x5bd   :  { %v659_v11 = vsel %vm657_vm11, %v656_v10, %v650_v9 }
 0x5be   :  { %1646 = vmatmul.msk.f32.gmra.mxu2 %vm150_vm1, %v659_v11 }
 0x631   :  { %v691_v13 = vpop.f32.mrf.mxu2 }
 0x632   :  { %v692_v14 = vadd.f32 %v1776_v12, %v691_v13  ;;  %v820_v13 = vld [vmem:[%s2755_s13 + $0x50] sm:$0xff] }
 0x634   :  { %v2340_v25 = vadd.f32 %v692_v14, %v2095_v32  ;;  %v819_v14 = vld [vmem:[%s2755_s13 + $0x48] sm:$0xff] }
 0x636   :  { %v701_v26 = vsel %vm150_vm1, %v2340_v25, 0.0 }
 0x637   :  { %702 = vadd.xlane.f32.xlu2 %v701_v26  ;;  %v818_v26 = vld [vmem:[%s2755_s13 + $0x40] sm:$0xff] }
 0x641   :  { %v694_v15 = vpop.f32.mrf.mxu2 }
 0x642   :  { %v695_v16 = vadd.f32 %v1776_v12, %v694_v15  ;;  %v821_v12 = vld [vmem:[%s2755_s13 + $0x58] sm:$0xff] }
 0x643   :  { %834 = vmatpush.msra.mxu0 %v821_v12  ;;  %v817_v15 = vld [vmem:[%s2755_s13 + $0x38] sm:$0xff]  ;;  %v1653_v12 = vld [vmem:[%s2748_s6 + $0x30] sm:$0xff] }
 0x644   :  { %v2345_v17 = vadd.f32 %v695_v16, %v2102_v38  ;;  %v816_v16 = vld [vmem:[%s2755_s13 + $0x30] sm:$0xff] }
 0x645   :  { %835 = vmatpush.msra.mxu0 %v820_v13  ;;  %v1652_v13 = vld [vmem:[%s2748_s6 + $0x28] sm:$0xff] }
 0x646   :  { %v704_v18 = vsel %vm150_vm1, %v2345_v17, 0.0 }
 0x647   :  { %705 = vadd.xlane.f32.xlu0 %v704_v18  ;;  %836 = vmatpush.msra.mxu0 %v819_v14  ;;  %v815_v18 = vld [vmem:[%s2755_s13 + $0x28] sm:$0xff]  ;;  %v1651_v14 = vld [vmem:[%s2748_s6 + $0x20] sm:$0xff] }
 0x649   :  { %837 = vmatpush.msra.mxu0 %v818_v26 }
 0x64b   :  { %838 = vmatpush.msra.mxu0 %v817_v15 }
 0x64d   :  { %839 = vmatpush.msra.mxu0 %v816_v16 }
 0x64f   :  { %840 = vmatpush.msra.mxu0 %v815_v18 }
 0x6aa   :  { %v703_v19 = vpop.xlane.xlu2 %702 }
 0x6ab   :  { %v707_v20 = vmul.f32 %v703_v19, %v2106_v46  ;;  %v814_v19 = vld [vmem:[%s2755_s13 + $0x20] sm:$0xff] }
 0x6ac   :  { %841 = vmatpush.msra.mxu0 %v814_v19 }
 0x6ad   :  { %v709_v21 = vsub.f32 %v2340_v25, %v707_v20  ;;  %v813_v20 = vld [vmem:[%s2755_s13 + $0x18] sm:$0xff] }
 0x6ae   :  { %842 = vmatpush.msra.mxu0 %v813_v20 }
 0x6af   :  { %v711_v32 = vmul.f32 %v709_v21, %v709_v21 }
 0x6b1   :  { %v713_v22 = vsel %vm150_vm1, %v711_v32, 0.0  ;;  %v811_v32 = vld [vmem:[%s2755_s13 + $0x8] sm:$0xff] }
 0x6b2   :  { %714 = vadd.xlane.f32.xlu1 %v713_v22  ;;  %v810_v22 = vld [vmem:[%s2755_s13] sm:$0xff] }
 0x6ba   :  { %v706_v23 = vpop.xlane.xlu0 %705 }
 0x6bb   :  { %v708_v27 = vmul.f32 %v706_v23, %v2106_v46  ;;  %v1779_v23 = vld [vmem:[%s2754_s12] ss:$0 sm:$0xff] }
 0x6bd   :  { %v710_v24 = vsub.f32 %v2345_v17, %v708_v27 }
 0x6bf   :  { %v712_v38 = vmul.f32 %v710_v24, %v710_v24 }
 0x6c1   :  { %v716_v28 = vsel %vm150_vm1, %v712_v38, 0.0 }
 0x6c2   :  { %717 = vadd.xlane.f32.xlu1 %v716_v28 }
 0x725   :  { %v715_v34 = vpop.xlane.xlu1 %714 }
 0x726   :  { %v719_v35 = vmul.f32 %v715_v34, %v2106_v46 }
 0x728   :  { %v721_v36 = vadd.f32 1e-05, %v719_v35 }
 0x72a   :  { %1828 = vrsqrt.f32 %v721_v36  ;;  %vm729_vm13 = vweird.f32 %v721_v36 }
 0x730   :  { %v1829_v37 = vpop.eup %1828 }
 0x731   :  { %v724_v39 = vmul.f32 %v1829_v37, %v721_v36  ;;  %vm730_vm12 = vweird.f32 %v1829_v37 }
 0x732   :  { %vm731_vm14 = vmor %vm729_vm13, %vm730_vm12 }
 0x733   :  { %v725_v43 = vmul.f32 %v1829_v37, %v724_v39 }
 0x735   :  { %v726_v47 = vmul.f32 0.5, %v725_v43  ;;  %v718_v48 = vpop.xlane.xlu1 %717 }
 0x736   :  { %v720_v49 = vmul.f32 %v718_v48, %v2106_v46 }
 0x737   :  { %v727_v42 = vsub.f32 1.5, %v726_v47 }
 0x738   :  { %v722_v52 = vadd.f32 1e-05, %v720_v49 }
 0x739   :  { %v728_v54 = vmul.f32 %v1829_v37, %v727_v42 }
 0x73a   :  { %1830 = vrsqrt.f32 %v722_v52  ;;  %vm739_vm0 = vweird.f32 %v722_v52 }
 0x73b   :  { %v732_v57 = vsel %vm731_vm14, %v1829_v37, %v728_v54 }
 0x73c   :  { %v743_v58 = vmul.f32 %v732_v57, %v709_v21  ;;  %v812_v21 = vld [vmem:[%s2755_s13 + $0x10] sm:$0xff] }
 0x73d   :  { %843 = vmatpush.msra.mxu0 %v812_v21 }
 0x73e   :  { %v748_v62 = vmul.f32 %v1777_v55, %v743_v58 }
 0x73f   :  { %844 = vmatpush.msra.mxu0 %v811_v32 }
 0x740   :  { %v1831_v63 = vpop.eup %1830  ;;  %v753_v0 = vadd.f32 %v1778_v59, %v748_v62 }
 0x741   :  { %v734_v1 = vmul.f32 %v1831_v63, %v722_v52  ;;  %vm740_vm15 = vweird.f32 %v1831_v63  ;;  %845 = vmatpush.msra.mxu0 %v810_v22  ;;  %v1780_v52 = vld [vmem:[%s2756_s14] ss:$0 sm:$0xff] }
 0x742   :  { %1647 = vmatmul.msk.f32.vlgmr.msra.gmra.mxu3 %vm150_vm1, %v753_v0  ;;  %vm741_vm2 = vmor %vm739_vm0, %vm740_vm15  ;;  %vm1569_vm15 = vcmask 254976  }
 0x743   :  { %v735_v2 = vmul.f32 %v1831_v63, %v734_v1 }
 0x745   :  { %v736_v3 = vmul.f32 0.5, %v735_v2 }
 0x747   :  { %v737_v6 = vsub.f32 1.5, %v736_v3 }
 0x749   :  { %v738_v7 = vmul.f32 %v1831_v63, %v737_v6 }
 0x74b   :  { %v742_v8 = vsel %vm741_vm2, %v1831_v63, %v738_v7 }
 0x74c   :  { %v744_v9 = vmul.f32 %v742_v8, %v710_v24 }
 0x74e   :  { %v749_v10 = vmul.f32 %v1777_v55, %v744_v9 }
 0x750   :  { %v754_v11 = vadd.f32 %v1778_v59, %v749_v10 }
 0x752   :  { %1648 = vmatmul.msk.f32.gmra.mxu3 %vm150_vm1, %v754_v11  ;;  %v1654_v11 = vld [vmem:[%s2748_s6 + $0x38] sm:$0xff] }
 0x753   :  { %936 = vmatpush.msrb.mxu1 %v1654_v11 }
 0x755   :  { %937 = vmatpush.msrb.mxu1 %v1653_v12 }
 0x757   :  { %938 = vmatpush.msrb.mxu1 %v1652_v13 }
 0x759   :  { %939 = vmatpush.msrb.mxu1 %v1651_v14 }
 0x7c5   :  { %v786_v27 = vpop.f32.mrf.mxu3 }
 0x7c6   :  { %v787_v24 = vadd.f32 %v1779_v23, %v786_v27 }
 0x7c8   :  { %v794_v38 = vmul.f32 0.044715, %v787_v24  ;;  %v792_v37 = vmul.f32 0.5, %v787_v24 }
 0x7ca   :  { %v796_v28 = vmul.f32 %v794_v38, %v787_v24  ;;  %v1781_v38 = vld [vmem:[%s2746_s4 + $0x1] ss:$0 sm:$0xff]  ;;  %s2768_s4 = smov 8  }
 0x7cc   :  { %v798_v29 = vmul.f32 %v796_v28, %v787_v24 }
 0x7ce   :  { %v800_v31 = vadd.f32 %v798_v29, %v787_v24 }
 0x7d0   :  { %v802_v30 = vmul.f32 0.7978846, %v800_v31  ;;  %v1782_v31 = vld [vmem:[%s2747_s5 + $0x1] ss:$0 sm:$0xff] }
 0x7d2   :  { %1832 = vtanh.f32 %v802_v30 }
 0x7d5   :  { %v789_v33 = vpop.f32.mrf.mxu3 }
 0x7d6   :  { %v790_v34 = vadd.f32 %v1779_v23, %v789_v33 }
 0x7d8   :  { %v1833_v35 = vpop.eup %1832  ;;  %v795_v36 = vmul.f32 0.044715, %v790_v34  ;;  %v793_v49 = vmul.f32 0.5, %v790_v34 }
 0x7d9   :  { %v806_v39 = vadd.f32 1.0, %v1833_v35 }
 0x7da   :  { %v797_v40 = vmul.f32 %v795_v36, %v790_v34 }
 0x7db   :  { %v808_v41 = vmul.f32 %v806_v39, %v792_v37 }
 0x7dc   :  { %v799_v43 = vmul.f32 %v797_v40, %v790_v34 }
 0x7dd   :  { %846 = vmatmul.f32.vlgmr.msra.gmra.mxu0 %v808_v41 }
 0x7de   :  { %v801_v44 = vadd.f32 %v799_v43, %v790_v34 }
 0x7e0   :  { %v803_v47 = vmul.f32 0.7978846, %v801_v44 }
 0x7e2   :  { %1834 = vtanh.f32 %v803_v47 }
 0x7e8   :  { %v1835_v48 = vpop.eup %1834 }
 0x7e9   :  { %v807_v51 = vadd.f32 1.0, %v1835_v48 }
 0x7eb   :  { %v809_v42 = vmul.f32 %v807_v51, %v793_v49 }
 0x7ed   :  { %849 = vmatmul.f32.gmra.mxu0 %v809_v42 }
 0x85a   :  { %v847_v54 = vpop.f32.mrf.mxu0 }
 0x85b   :  { %v848_v55 = vadd.f32 %v1780_v52, %v847_v54 }
 0x85d   :  { %v2432_v57 = vadd.f32 %v848_v55, %v2340_v25 }
 0x85f   :  { %v859_v58 = vsel %vm150_vm1, %v2432_v57, 0.0 }
 0x860   :  { %860 = vadd.xlane.f32.xlu1 %v859_v58 }
 0x86a   :  { %v850_v59 = vpop.f32.mrf.mxu0 }
 0x86b   :  { %v851_v62 = vadd.f32 %v1780_v52, %v850_v59 }
 0x86d   :  { %v2437_v63 = vadd.f32 %v851_v62, %v2345_v17 }
 0x86f   :  { %v862_v0 = vsel %vm150_vm1, %v2437_v63, 0.0 }
 0x870   :  { %863 = vadd.xlane.f32.xlu1 %v862_v0 }
 0x8d3   :  { %v861_v1 = vpop.xlane.xlu1 %860 }
 0x8d4   :  { %v865_v2 = vmul.f32 %v861_v1, %v2106_v46 }
 0x8d6   :  { %v867_v3 = vsub.f32 %v2432_v57, %v865_v2 }
 0x8d8   :  { %v869_v25 = vmul.f32 %v867_v3, %v867_v3 }
 0x8da   :  { %v871_v6 = vsel %vm150_vm1, %v869_v25, 0.0 }
 0x8db   :  { %872 = vadd.xlane.f32.xlu1 %v871_v6 }
 0x8e3   :  { %v864_v7 = vpop.xlane.xlu1 %863 }
 0x8e4   :  { %v866_v8 = vmul.f32 %v864_v7, %v2106_v46 }
 0x8e6   :  { %v868_v9 = vsub.f32 %v2437_v63, %v866_v8 }
 0x8e8   :  { %v870_v17 = vmul.f32 %v868_v9, %v868_v9 }
 0x8ea   :  { %v874_v10 = vsel %vm150_vm1, %v870_v17, 0.0 }
 0x8eb   :  { %875 = vadd.xlane.f32.xlu2 %v874_v10 }
 0x94e   :  { %v873_v26 = vpop.xlane.xlu1 %872 }
 0x94f   :  { %v877_v15 = vmul.f32 %v873_v26, %v2106_v46 }
 0x951   :  { %v879_v16 = vadd.f32 1e-05, %v877_v15 }
 0x953   :  { %1836 = vrsqrt.f32 %v879_v16  ;;  %vm887_vm4 = vweird.f32 %v879_v16 }
 0x959   :  { %v1837_v18 = vpop.eup %1836 }
 0x95a   :  { %v882_v19 = vmul.f32 %v1837_v18, %v879_v16  ;;  %vm888_vm3 = vweird.f32 %v1837_v18 }
 0x95b   :  { %vm889_vm5 = vmor %vm887_vm4, %vm888_vm3 }
 0x95c   :  { %v883_v20 = vmul.f32 %v1837_v18, %v882_v19 }
 0x95e   :  { %v884_v21 = vmul.f32 0.5, %v883_v20  ;;  %v876_v32 = vpop.xlane.xlu2 %875 }
 0x95f   :  { %v878_v22 = vmul.f32 %v876_v32, %v2106_v46 }
 0x960   :  { %v885_v23 = vsub.f32 1.5, %v884_v21 }
 0x961   :  { %v880_v27 = vadd.f32 1e-05, %v878_v22 }
 0x962   :  { %v886_v24 = vmul.f32 %v1837_v18, %v885_v23 }
 0x963   :  { %1838 = vrsqrt.f32 %v880_v27  ;;  %vm897_vm7 = vweird.f32 %v880_v27 }
 0x964   :  { %v890_v28 = vsel %vm889_vm5, %v1837_v18, %v886_v24 }
 0x965   :  { %v901_v29 = vmul.f32 %v890_v28, %v867_v3 }
 0x967   :  { %v906_v30 = vmul.f32 %v1781_v38, %v901_v29 }
 0x969   :  { %v1839_v33 = vpop.eup %1838  ;;  %v911_v34 = vadd.f32 %v1782_v31, %v906_v30 }
 0x96a   :  { %v892_v35 = vmul.f32 %v1839_v33, %v880_v27  ;;  %vm898_vm6 = vweird.f32 %v1839_v33 }
 0x96b   :  { %1655 = vmatmul.msk.f32.vlgmr.msrb.gmra.mxu1 %vm150_vm1, %v911_v34  ;;  %vm899_vm8 = vmor %vm897_vm7, %vm898_vm6 }
 0x96c   :  { %v893_v36 = vmul.f32 %v1839_v33, %v892_v35 }
 0x96e   :  { %v894_v37 = vmul.f32 0.5, %v893_v36 }
 0x970   :  { %v895_v39 = vsub.f32 1.5, %v894_v37 }
 0x972   :  { %v896_v40 = vmul.f32 %v1839_v33, %v895_v39 }
 0x974   :  { %v900_v41 = vsel %vm899_vm8, %v1839_v33, %v896_v40 }
 0x975   :  { %v902_v43 = vmul.f32 %v900_v41, %v868_v9 }
 0x977   :  { %v907_v44 = vmul.f32 %v1781_v38, %v902_v43 }
 0x979   :  { %v912_v47 = vadd.f32 %v1782_v31, %v907_v44 }
 0x97b   :  { %1656 = vmatmul.msk.f32.gmra.mxu1 %vm150_vm1, %v912_v47 }
 0x9e8   :  { %v2469_v48 = vpop.f32.mrf.mxu1 }
 0x9e9   :  { %957 = vrot.lane.b32.xlu2 %v2469_v48, %s1912_s2 }
 0x9f8   :  { %v2473_v49 = vpop.f32.mrf.mxu1 }
 0x9f9   :  { %963 = vrot.lane.b32.xlu2 %v2473_v49, %s1911_s23  ;;  %951 = vrot.lane.b32.xlu1 %v2473_v49, %s1909_s21 }
 0x9fa   :  { %959 = vrot.lane.b32.xlu0 %v2473_v49, %s1912_s2 }
 0xa01   :  { %955 = vrot.lane.b32.xlu1 %v2473_v49, %s1910_s22 }
 0xa02   :  { %949 = vrot.lane.b32.xlu0 %v2469_v48, %s1909_s21 }
 0xa09   :  { %961 = vrot.lane.b32.xlu1 %v2469_v48, %s1911_s23 }
 0xa0a   :  { %953 = vrot.lane.b32.xlu0 %v2469_v48, %s1910_s22 }
 0xa43   :  { %v2489_v51 = vpop.permute.xlu2 %957 }
 0xa44   :  { %1066 = vrot.lane.b32.xlu1 %v2489_v51, %s1911_s23 }
 0xa53   :  { %v964_v42 = vpop.permute.xlu2 %963 }
 0xa54   :  { %1657 = vmatpush.xpose.msk.msrb.mxu2 %vm263_vm9, %v964_v42 }
 0xa6b   :  { %v2494_v52 = vpop.permute.xlu1 %951 }
 0xa6c   :  { %v2496_v54 = vpop.permute.xlu0 %959  ;;  %998 = vrot.lane.b32.xlu2 %v2494_v52, %s1911_s23 }
 0xa6d   :  { %1068 = vrot.lane.b32.xlu0 %v2496_v54, %s1911_s23 }
 0xa73   :  { %v2502_v55 = vpop.permute.xlu1 %955 }
 0xa74   :  { %v2504_v58 = vpop.permute.xlu0 %949  ;;  %1033 = vrot.lane.b32.xlu2 %v2502_v55, %s1911_s23 }
 0xa75   :  { %996 = vrot.lane.b32.xlu0 %v2504_v58, %s1911_s23 }
 0xa7b   :  { %v962_v59 = vpop.permute.xlu1 %961 }
 0xa7c   :  { %v2510_v62 = vpop.permute.xlu0 %953  ;;  %1658 = vmatpush.xpose.msk.msrb.mxu2 %vm263_vm9, %v962_v59 }
 0xa7d   :  { %1031 = vrot.lane.b32.xlu1 %v2510_v62, %s1911_s23 }
 0xa7f   :  { %1659 = vmatmul.msk.f32.vlgmr.msrb.gmra.mxu2 %vm263_vm9, %v2469_v48 }
 0xa87   :  { %1660 = vmatmul.msk.f32.gmra.mxu2 %vm263_vm9, %v2473_v49 }
 0xab6   :  { %v1067_v3 = vpop.permute.xlu1 %1066 }
 0xac6   :  { %v999_v0 = vpop.permute.xlu2 %998 }
 0xac7   :  { %1661 = vmatpush.xpose.msk.msrb.mxu3 %vm263_vm9, %v999_v0 }
 0xace   :  { %v1034_v1 = vpop.permute.xlu2 %1033 }
 0xacf   :  { %1665 = vmatpush.xpose.msk.msra.mxu1 %vm263_vm9, %v1034_v1 }
 0xadf   :  { %v1069_v2 = vpop.permute.xlu0 %1068 }
 0xae0   :  { %1669 = vmatpush.xpose.msk.msra.mxu2 %vm263_vm9, %v1069_v2 }
 0xae4   :  { %1670 = vmatpush.xpose.msk.msra.mxu2 %vm263_vm9, %v1067_v3 }
 0xae7   :  { %1671 = vmatmul.msk.f32.vlgmr.msra.gmra.mxu2 %vm263_vm9, %v2489_v51  ;;  %v997_v25 = vpop.permute.xlu0 %996 }
 0xae8   :  { %1662 = vmatpush.xpose.msk.msrb.mxu3 %vm263_vm9, %v997_v25 }
 0xaeb   :  { %1663 = vmatmul.msk.f32.vlgmr.msrb.gmra.mxu3 %vm263_vm9, %v2504_v58 }
 0xaef   :  { %v1032_v6 = vpop.permute.xlu1 %1031  ;;  %1672 = vmatmul.msk.f32.gmra.mxu2 %vm263_vm9, %v2496_v54 }
 0xaf0   :  { %1666 = vmatpush.xpose.msk.msra.mxu1 %vm263_vm9, %v1032_v6 }
 0xaf3   :  { %1664 = vmatmul.msk.f32.gmra.mxu3 %vm263_vm9, %v2494_v52  ;;  %1667 = vmatmul.msk.f32.vlgmr.msra.gmra.mxu1 %vm263_vm9, %v2510_v62 }
 0xafb   :  { %1668 = vmatmul.msk.f32.gmra.mxu1 %vm263_vm9, %v2502_v55 }
 0xb02   :  { %v990_v7 = vpop.f32.mrf.mxu2 }
 0xb03   :  { %v2538_v8 = vadd.f32 %v990_v7, %v2256_v4  ;;  %v1754_v7 = vpack.i.bf16 %v2489_v51, %v2496_v54  ;;  %v1764_v51 = vpack.i.bf16 %v2510_v62, %v2504_v58 }
 0xb05   :  { %v1101_v9 = vsel %vm400_vm10, %v2538_v8, -inf }
 0xb06   :  { %1102 = vmax.xlane.f32.xlu0 %v1101_v9 }
 0xb0a   :  { %v993_v17 = vpop.f32.mrf.mxu2 }
 0xb6a   :  { %v1095_v10 = vpop.f32.mrf.mxu2 }
 0xb6b   :  { %v1096_v11 = vadd.f32 %v1095_v10, %v2231_v56 }
 0xb6d   :  { %v1119_v12 = vsel %vm400_vm10, %v1096_v11, -inf }
 0xb6e   :  { %1120 = vmax.xlane.f32.xlu0 %v1119_v12  ;;  %v1025_v13 = vpop.f32.mrf.mxu3 }
 0xb6f   :  { %v1026_v14 = vadd.f32 %v1025_v13, %v2219_v50 }
 0xb70   :  { %v1060_v26 = vpop.f32.mrf.mxu1 }
 0xb71   :  { %v1061_v15 = vadd.f32 %v1060_v26, %v2209_v45  ;;  %v1107_v4 = vsel %vm400_vm10, %v1026_v14, -inf }
 0xb72   :  { %v1098_v16 = vpop.f32.mrf.mxu2  ;;  %1108 = vmax.xlane.f32.xlu2 %v1107_v4 }
 0xb73   :  { %v1099_v18 = vadd.f32 %v1098_v16, %v2261_v5  ;;  %v1113_v19 = vsel %vm400_vm10, %v1061_v15, -inf  ;;  %v994_v5 = vadd.f32 %v993_v17, %v2246_v61  ;;  %v1759_v17 = vpack.i.bf16 %v2502_v55, %v2494_v52 }
 0xb74   :  { %1114 = vmax.xlane.f32.xlu1 %v1113_v19 }
 0xb75   :  { %v1122_v56 = vsel %vm400_vm10, %v1099_v18, -inf  ;;  %v1104_v23 = vsel %vm400_vm10, %v994_v5, -inf }
 0xb76   :  { %1123 = vmax.xlane.f32.xlu0 %v1122_v56  ;;  %v1028_v20 = vpop.f32.mrf.mxu3 }
 0xb77   :  { %v1029_v21 = vadd.f32 %v1028_v20, %v2241_v60 }
 0xb78   :  { %v1063_v32 = vpop.f32.mrf.mxu1 }
 0xb79   :  { %v1064_v50 = vadd.f32 %v1063_v32, %v2225_v53  ;;  %v1110_v45 = vsel %vm400_vm10, %v1029_v21, -inf  ;;  %v1103_v27 = vpop.xlane.xlu0 %1102 }
 0xb7a   :  { %1111 = vmax.xlane.f32.xlu2 %v1110_v45  ;;  %v1125_v54 = vsub.f32 %v2538_v8, %v1103_v27 }
 0xb7b   :  { %v1116_v22 = vsel %vm400_vm10, %v1064_v50, -inf }
 0xb7c   :  { %1117 = vmax.xlane.f32.xlu1 %v1116_v22  ;;  %v1133_v12 = vmul.f32 1.442695, %v1125_v54 }
 0xb82   :  { %1105 = vmax.xlane.f32.xlu2 %v1104_v23 }
 0xbe1   :  { %v1121_v24 = vpop.xlane.xlu0 %1120 }
 0xbe2   :  { %v1131_v38 = vsub.f32 %v1096_v11, %v1121_v24  ;;  %v1769_v11 = vpack.i.bf16 %v2469_v48, %v2473_v49 }
 0xbe4   :  { %v1145_v28 = vmul.f32 1.442695, %v1131_v38 }
 0xbe5   :  { %v1109_v29 = vpop.xlane.xlu2 %1108 }
 0xbe6   :  { %1840 = vpow2.f32 %v1145_v28  ;;  %v1127_v60 = vsub.f32 %v1026_v14, %v1109_v29 }
 0xbe7   :  { %v1115_v31 = vpop.xlane.xlu1 %1114 }
 0xbe8   :  { %v1137_v53 = vmul.f32 1.442695, %v1127_v60  ;;  %v1129_v30 = vsub.f32 %v1061_v15, %v1115_v31 }
 0xbe9   :  { %v1124_v35 = vpop.xlane.xlu0 %1123 }
 0xbea   :  { %1842 = vpow2.f32 %v1137_v53  ;;  %v1141_v33 = vmul.f32 1.442695, %v1129_v30  ;;  %v1132_v43 = vsub.f32 %v1099_v18, %v1124_v35 }
 0xbec   :  { %v2556_v34 = vpop.eup %1840  ;;  %1844 = vpow2.f32 %v1141_v33  ;;  %v1147_v42 = vmul.f32 1.442695, %v1132_v43 }
 0xbed   :  { %v1167_v61 = vsel %vm400_vm10, %v2556_v34, 0.0  ;;  %v1112_v59 = vpop.xlane.xlu2 %1111 }
 0xbee   :  { %1168 = vadd.xlane.f32.xlu1 %v1167_v61  ;;  %v1128_v1 = vsub.f32 %v1029_v21, %v1112_v59 }
 0xbef   :  { %v1118_v36 = vpop.xlane.xlu1 %1117 }
 0xbf0   :  { %v2560_v37 = vpop.eup %1842  ;;  %v1130_v39 = vsub.f32 %v1064_v50, %v1118_v36  ;;  %v1139_v3 = vmul.f32 1.442695, %v1128_v1 }
 0xbf1   :  { %v1155_v40 = vsel %vm400_vm10, %v2560_v37, 0.0 }
 0xbf2   :  { %v2564_v41 = vpop.eup %1844  ;;  %v1143_v44 = vmul.f32 1.442695, %v1130_v39  ;;  %1156 = vadd.xlane.f32.xlu0 %v1155_v40 }
 0xbf3   :  { %v1161_v47 = vsel %vm400_vm10, %v2564_v41, 0.0 }
 0xbf4   :  { %1846 = vpow2.f32 %v1143_v44  ;;  %1162 = vadd.xlane.f32.xlu2 %v1161_v47 }
 0xbf5   :  { %1848 = vpow2.f32 %v1147_v42  ;;  %v1106_v52 = vpop.xlane.xlu2 %1105 }
 0xbf6   :  { %1850 = vpow2.f32 %v1139_v3  ;;  %v1126_v55 = vsub.f32 %v994_v5, %v1106_v52  ;;  %v1683_v3 = vld [vmem:[%s2749_s7 + $0x30] sm:$0xff] }
 0xbf7   :  { %1852 = vpow2.f32 %v1133_v12 }
 0xbf8   :  { %v1135_v14 = vmul.f32 1.442695, %v1126_v55 }
 0xbfa   :  { %v2568_v0 = vpop.eup %1846  ;;  %1854 = vpow2.f32 %v1135_v14 }
 0xbfb   :  { %v1164_v2 = vsel %vm400_vm10, %v2568_v0, 0.0  ;;  %v1849_v25 = vpop.eup %1848 }
 0xbfc   :  { %1165 = vadd.xlane.f32.xlu0 %v1164_v2  ;;  %v1170_v6 = vsel %vm400_vm10, %v1849_v25, 0.0  ;;  %v2576_v9 = vpop.eup %1850  ;;  %v1684_v2 = vld [vmem:[%s2749_s7 + $0x38] sm:$0xff] }
 0xbfd   :  { %v1158_v10 = vsel %vm400_vm10, %v2576_v9, 0.0  ;;  %v1853_v13 = vpop.eup %1852 }
 0xbfe   :  { %v1149_v26 = vsel %vm400_vm10, %v1853_v13, 0.0 }
 0xc00   :  { %v1855_v48 = vpop.eup %1854 }
 0xc01   :  { %v1152_v49 = vsel %vm400_vm10, %v1855_v48, 0.0 }
 0xc04   :  { %1171 = vadd.xlane.f32.xlu0 %v1170_v6  ;;  %v1681_v6 = vld [vmem:[%s2749_s7 + $0x20] sm:$0xff] }
 0xc07   :  { %1755 = vrot.lane.b32.xlu1 %v1754_v7, %s1913_s18 }
 0xc0c   :  { %1760 = vrot.lane.b32.xlu2 %v1759_v17, %s1913_s18  ;;  %1159 = vadd.xlane.f32.xlu0 %v1158_v10 }
 0xc14   :  { %1770 = vrot.lane.b32.xlu2 %v1769_v11, %s1913_s18 }
 0xc20   :  { %1765 = vrot.lane.b32.xlu0 %v1764_v51, %s1913_s18 }
 0xc31   :  { %1150 = vadd.xlane.f32.xlu1 %v1149_v26 }
 0xc3d   :  { %1153 = vadd.xlane.f32.xlu2 %v1152_v49  ;;  %v1783_v49 = vld [vmem:[%s2750_s8 + $0x1] ss:$0 sm:$0xff] }
 0xc61   :  { %v1169_v18 = vpop.xlane.xlu1 %1168 }
 0xc62   :  { %1856 = vrcp.f32 %v1169_v18 }
 0xc65   :  { %v1157_v15 = vpop.xlane.xlu0 %1156 }
 0xc67   :  { %v1163_v58 = vpop.xlane.xlu2 %1162 }
 0xc68   :  { %v1857_v32 = vpop.eup %1856 }
 0xc69   :  { %v1187_v5 = vmul.f32 %v1857_v32, %v2556_v34 }
 0xc6f   :  { %v1761_v62 = vpop.permute.xlu2 %1760  ;;  %v1166_v8 = vpop.xlane.xlu0 %1165 }
 0xc70   :  { %v1763_v4 = vunpack.i.h.bf16 %v1761_v62  ;;  %v1762_v16 = vunpack.i.l.bf16 %v1761_v62 }
 0xc72   :  { %1250 = vmatpush.msrb.mxu0 %v1762_v16  ;;  %1285 = vmatpush.msrb.mxu1 %v1763_v4 }
 0xc77   :  { %v1771_v19 = vpop.permute.xlu2 %1770  ;;  %v1172_v20 = vpop.xlane.xlu0 %1171 }
 0xc78   :  { %v1772_v56 = vunpack.i.l.bf16 %v1771_v19  ;;  %v1773_v50 = vunpack.i.h.bf16 %v1771_v19  ;;  %1858 = vrcp.f32 %v1172_v20 }
 0xc79   :  { %v1756_v21 = vpop.permute.xlu1 %1755  ;;  %1860 = vrcp.f32 %v1157_v15 }
 0xc7a   :  { %v1757_v45 = vunpack.i.l.bf16 %v1756_v21  ;;  %1215 = vmatpush.msra.mxu3 %v1772_v56  ;;  %v1758_v22 = vunpack.i.h.bf16 %v1756_v21  ;;  %1862 = vrcp.f32 %v1163_v58 }
 0xc7b   :  { %1864 = vrcp.f32 %v1166_v8 }
 0xc7c   :  { %1216 = vmatpush.msra.mxu3 %v1773_v50  ;;  %1320 = vmatpush.msrb.mxu2 %v1757_v45 }
 0xc7e   :  { %1321 = vmatpush.msrb.mxu2 %v1758_v22  ;;  %v1859_v23 = vpop.eup %1858  ;;  %1387 = vmatpush.msrb.mxu3 %v1684_v2  ;;  %v1785_v2 = vld [vmem:[%s2752_s10 + $0x1] ss:$0 sm:$0xff] }
 0xc7f   :  { %1679 = vmatmul.msk.f32.vlgmr.msrb.gmra.mxu2 %vm400_vm10, %v1187_v5  ;;  %v1188_v27 = vmul.f32 %v1859_v23, %v1849_v25  ;;  %v1160_v24 = vpop.xlane.xlu0 %1159  ;;  %v1861_v38 = vpop.eup %1860  ;;  %v1682_v25 = vld [vmem:[%s2749_s7 + $0x28] sm:$0xff]  ;;  %v1693_v23 = vld [vmem:[%s2753_s11 + $0x38] sm:$0xff] }
 0xc80   :  { %v1863_v28 = vpop.eup %1862  ;;  %1866 = vrcp.f32 %v1160_v24  ;;  %v1183_v53 = vmul.f32 %v1861_v38, %v2560_v37  ;;  %1388 = vmatpush.msrb.mxu3 %v1683_v3  ;;  %v1691_v24 = vld [vmem:[%s2753_s11 + $0x28] sm:$0xff]  ;;  %v1690_v38 = vld [vmem:[%s2753_s11 + $0x20] sm:$0xff] }
 0xc81   :  { %v1185_v30 = vmul.f32 %v1863_v28, %v2564_v41  ;;  %v1865_v33 = vpop.eup %1864 }
 0xc82   :  { %v1186_v35 = vmul.f32 %v1865_v33, %v2568_v0  ;;  %1389 = vmatpush.msrb.mxu3 %v1682_v25 }
 0xc84   :  { %1390 = vmatpush.msrb.mxu3 %v1681_v6 }
 0xc86   :  { %v1867_v34 = vpop.eup %1866 }
 0xc87   :  { %1680 = vmatmul.msk.f32.gmra.mxu2 %vm400_vm10, %v1188_v27  ;;  %v1184_v61 = vmul.f32 %v1867_v34, %v2576_v9  ;;  %v1692_v27 = vld [vmem:[%s2753_s11 + $0x30] sm:$0xff] }
 0xc92   :  { %v1766_v29 = vpop.permute.xlu0 %1765 }
 0xc93   :  { %v1768_v60 = vunpack.i.h.bf16 %v1766_v29  ;;  %v1767_v31 = vunpack.i.l.bf16 %v1766_v29 }
 0xc95   :  { %1251 = vmatpush.msrb.mxu0 %v1767_v31  ;;  %1286 = vmatpush.msrb.mxu1 %v1768_v60  ;;  %v1712_v31 = vld [vmem:[%s2755_s13 + $0xf8] sm:$0xff] }
 0xc96   :  { %1675 = vmatmul.msk.f32.vlgmr.msrb.gmra.mxu0 %vm400_vm10, %v1183_v53  ;;  %1677 = vmatmul.msk.f32.vlgmr.msrb.gmra.mxu1 %vm400_vm10, %v1185_v30  ;;  %v1711_v53 = vld [vmem:[%s2755_s13 + $0xf0] sm:$0xff]  ;;  %v1710_v30 = vld [vmem:[%s2755_s13 + $0xe8] sm:$0xff] }
 0xc97   :  { %1486 = vmatpush.msra.mxu0 %v1693_v23  ;;  %1537 = vmatpush.msra.mxu1 %v1712_v31 }
 0xc99   :  { %1487 = vmatpush.msra.mxu0 %v1692_v27  ;;  %1538 = vmatpush.msra.mxu1 %v1711_v53 }
 0xc9b   :  { %1488 = vmatpush.msra.mxu0 %v1691_v24  ;;  %1539 = vmatpush.msra.mxu1 %v1710_v30 }
 0xc9d   :  { %1489 = vmatpush.msra.mxu0 %v1690_v38 }
 0xc9e   :  { %1676 = vmatmul.msk.f32.gmra.mxu0 %vm400_vm10, %v1184_v61  ;;  %1678 = vmatmul.msk.f32.gmra.mxu1 %vm400_vm10, %v1186_v35  ;;  %v1709_v61 = vld [vmem:[%s2755_s13 + $0xe0] sm:$0xff] }
 0xc9f   :  { %1540 = vmatpush.msra.mxu1 %v1709_v61 }
 0xca4   :  { %v1151_v36 = vpop.xlane.xlu1 %1150 }
 0xca5   :  { %1868 = vrcp.f32 %v1151_v36 }
 0xcab   :  { %v1869_v37 = vpop.eup %1868 }
 0xcac   :  { %v1181_v39 = vmul.f32 %v1869_v37, %v1853_v13 }
 0xcae   :  { %1673 = vmatmul.msk.f32.vlgmr.msra.gmra.mxu3 %vm400_vm10, %v1181_v39 }
 0xcb0   :  { %v1154_v40 = vpop.xlane.xlu2 %1153 }
 0xcb1   :  { %1870 = vrcp.f32 %v1154_v40 }
 0xcb7   :  { %v1871_v41 = vpop.eup %1870 }
 0xcb8   :  { %v1182_v43 = vmul.f32 %v1871_v41, %v1855_v48 }
 0xcba   :  { %1674 = vmatmul.msk.f32.gmra.mxu3 %vm400_vm10, %v1182_v43 }
 0xd02   :  { %v1323_v44 = vpop.f32.mrf.mxu2 }
 0xd0a   :  { %v1326_v47 = vpop.f32.mrf.mxu2 }
 0xd0b   :  { %1349 = vrot.lane.b32.xlu2 %v1326_v47, %s1916_s29  ;;  %v1784_v47 = vld [vmem:[%s2751_s9 + $0x1] ss:$0 sm:$0xff] }
 0xd13   :  { %v1253_v42 = vpop.f32.mrf.mxu0  ;;  %v1288_v59 = vpop.f32.mrf.mxu1 }
 0xd14   :  { %1339 = vrot.lane.b32.xlu0 %v1288_v59, %s1915_s28 }
 0xd1b   :  { %v1256_v0 = vpop.f32.mrf.mxu0  ;;  %v1291_v1 = vpop.f32.mrf.mxu1 }
 0xd1c   :  { %1331 = vrot.lane.b32.xlu0 %v1253_v42, %s2768_s4  ;;  %1333 = vrot.lane.b32.xlu1 %v1256_v0, %s2768_s4 }
 0xd24   :  { %1347 = vrot.lane.b32.xlu0 %v1323_v44, %s1916_s29 }
 0xd2c   :  { %1341 = vrot.lane.b32.xlu0 %v1291_v1, %s1915_s28  ;;  %s1917_s28 = smov [#allocation2]  }
 0xd2d   :  { %s1606_s8 = sshll.u32 %s1917_s28, 4  ;;  %s1607_s8 = int_to_ptr.vmem [resolvable:$true] %s1606_s8 }
 0xd31   :  { %v1218_v17 = vpop.f32.mrf.mxu3 }
 0xd3d   :  { %v1221_v52 = vpop.f32.mrf.mxu3 }
 0xd65   :  { %v1350_v14 = vpop.permute.xlu2 %1349 }
 0xd86   :  { %v1340_v7 = vpop.permute.xlu0 %1339 }
 0xd8e   :  { %v1332_v9 = vpop.permute.xlu0 %1331  ;;  %v1334_v12 = vpop.permute.xlu1 %1333 }
 0xd8f   :  { %v1353_v10 = vsel %vm263_vm9, %v1218_v17, %v1332_v9  ;;  %v1354_v55 = vsel %vm263_vm9, %v1221_v52, %v1334_v12  ;;  %v1707_v12 = vld [vmem:[%s2755_s13 + $0xd0] sm:$0xff]  ;;  %v1706_v52 = vld [vmem:[%s2755_s13 + $0xc8] sm:$0xff] }
 0xd90   :  { %v1355_v11 = vsel %vm400_vm10, %v1353_v10, %v1340_v7 }
 0xd96   :  { %v1348_v51 = vpop.permute.xlu0 %1347 }
 0xd97   :  { %v1357_v54 = vsel %vm657_vm11, %v1355_v11, %v1348_v51 }
 0xd98   :  { %1686 = vmatmul.msk.f32.vlgmr.msrb.gmra.mxu3 %vm150_vm1, %v1357_v54  ;;  %v1708_v54 = vld [vmem:[%s2755_s13 + $0xd8] sm:$0xff] }
 0xd99   :  { %1541 = vmatpush.msra.mxu1 %v1708_v54 }
 0xd9b   :  { %1542 = vmatpush.msra.mxu1 %v1707_v12 }
 0xd9d   :  { %1543 = vmatpush.msra.mxu1 %v1706_v52 }
 0xd9e   :  { %v1342_v13 = vpop.permute.xlu0 %1341 }
 0xd9f   :  { %v1356_v26 = vsel %vm400_vm10, %v1354_v55, %v1342_v13  ;;  %v1705_v55 = vld [vmem:[%s2755_s13 + $0xc0] sm:$0xff]  ;;  %v1704_v13 = vld [vmem:[%s2755_s13 + $0xb8] sm:$0xff] }
 0xda0   :  { %v1358_v48 = vsel %vm657_vm11, %v1356_v26, %v1350_v14  ;;  %1544 = vmatpush.msra.mxu1 %v1705_v55  ;;  %v1703_v14 = vld [vmem:[%s2755_s13 + $0xb0] sm:$0xff]  ;;  %v1702_v26 = vld [vmem:[%s2755_s13 + $0xa8] sm:$0xff] }
 0xda1   :  { %1687 = vmatmul.msk.f32.gmra.mxu3 %vm150_vm1, %v1358_v48  ;;  %v1701_v48 = vld [vmem:[%s2755_s13 + $0xa0] sm:$0xff] }
 0xda2   :  { %1545 = vmatpush.msra.mxu1 %v1704_v13 }
 0xda4   :  { %1546 = vmatpush.msra.mxu1 %v1703_v14 }
 0xda6   :  { %1547 = vmatpush.msra.mxu1 %v1702_v26 }
 0xda8   :  { %1548 = vmatpush.msra.mxu1 %v1701_v48 }
 0xe1b   :  { %v1392_v15 = vpop.f32.mrf.mxu3 }
 0xe1c   :  { %v1393_v58 = vadd.f32 %v1783_v49, %v1392_v15  ;;  %v1699_v15 = vld [vmem:[%s2755_s13 + $0x90] sm:$0xff] }
 0xe1e   :  { %v2635_v62 = vadd.f32 %v1393_v58, %v2432_v57  ;;  %v1698_v58 = vld [vmem:[%s2755_s13 + $0x88] sm:$0xff] }
 0xe20   :  { %v1404_v8 = vsel %vm150_vm1, %v2635_v62, 0.0 }
 0xe21   :  { %1405 = vadd.xlane.f32.xlu0 %v1404_v8  ;;  %v1697_v8 = vld [vmem:[%s2755_s13 + $0x80] sm:$0xff] }
 0xe24   :  { %v1395_v4 = vpop.f32.mrf.mxu3 }
 0xe25   :  { %v1396_v16 = vadd.f32 %v1783_v49, %v1395_v4  ;;  %v1700_v49 = vld [vmem:[%s2755_s13 + $0x98] sm:$0xff]  ;;  %v1786_v4 = vld [vmem:[%s2754_s12 + $0x1] ss:$0 sm:$0xff] }
 0xe26   :  { %1549 = vmatpush.msra.mxu1 %v1700_v49 }
 0xe27   :  { %v2640_v18 = vadd.f32 %v1396_v16, %v2437_v63 }
 0xe28   :  { %1550 = vmatpush.msra.mxu1 %v1699_v15 }
 0xe29   :  { %v1407_v19 = vsel %vm150_vm1, %v2640_v18, 0.0 }
 0xe2a   :  { %1408 = vadd.xlane.f32.xlu1 %v1407_v19  ;;  %1551 = vmatpush.msra.mxu1 %v1698_v58 }
 0xe2c   :  { %1552 = vmatpush.msra.mxu1 %v1697_v8 }
 0xe94   :  { %v1406_v56 = vpop.xlane.xlu0 %1405 }
 0xe95   :  { %v1410_v20 = vmul.f32 %v1406_v56, %v2106_v46 }
 0xe97   :  { %v1412_v21 = vsub.f32 %v2635_v62, %v1410_v20 }
 0xe99   :  { %v1414_v57 = vmul.f32 %v1412_v21, %v1412_v21 }
 0xe9b   :  { %v1416_v32 = vsel %vm150_vm1, %v1414_v57, 0.0 }
 0xe9c   :  { %1417 = vadd.xlane.f32.xlu2 %v1416_v32 }
 0xe9d   :  { %v1409_v50 = vpop.xlane.xlu1 %1408 }
 0xe9e   :  { %v1411_v45 = vmul.f32 %v1409_v50, %v2106_v46 }
 0xea0   :  { %v1413_v22 = vsub.f32 %v2640_v18, %v1411_v45 }
 0xea2   :  { %v1415_v63 = vmul.f32 %v1413_v22, %v1413_v22 }
 0xea4   :  { %v1419_v5 = vsel %vm150_vm1, %v1415_v63, 0.0 }
 0xea5   :  { %1420 = vadd.xlane.f32.xlu0 %v1419_v5 }
 0xf0f   :  { %v1418_v28 = vpop.xlane.xlu2 %1417 }
 0xf10   :  { %v1422_v29 = vmul.f32 %v1418_v28, %v2106_v46 }
 0xf12   :  { %v1424_v60 = vadd.f32 1e-05, %v1422_v29 }
 0xf14   :  { %1872 = vrsqrt.f32 %v1424_v60  ;;  %vm1432_vm10 = vweird.f32 %v1424_v60 }
 0xf18   :  { %v1421_v33 = vpop.xlane.xlu0 %1420 }
 0xf19   :  { %v1423_v34 = vmul.f32 %v1421_v33, %v2106_v46 }
 0xf1a   :  { %v1873_v35 = vpop.eup %1872 }
 0xf1b   :  { %v1427_v36 = vmul.f32 %v1873_v35, %v1424_v60  ;;  %v1425_v37 = vadd.f32 1e-05, %v1423_v34  ;;  %vm1433_vm9 = vweird.f32 %v1873_v35  ;;  %v1787_v34 = vld [vmem:[%s2756_s14 + $0x1] ss:$0 sm:$0xff] }
 0xf1c   :  { %vm1434_vm11 = vmor %vm1432_vm10, %vm1433_vm9 }
 0xf1d   :  { %v1428_v39 = vmul.f32 %v1873_v35, %v1427_v36  ;;  %1874 = vrsqrt.f32 %v1425_v37  ;;  %vm1442_vm13 = vweird.f32 %v1425_v37 }
 0xf1f   :  { %v1429_v40 = vmul.f32 0.5, %v1428_v39 }
 0xf21   :  { %v1430_v41 = vsub.f32 1.5, %v1429_v40 }
 0xf23   :  { %v1875_v43 = vpop.eup %1874  ;;  %v1431_v44 = vmul.f32 %v1873_v35, %v1430_v41 }
 0xf24   :  { %v1437_v42 = vmul.f32 %v1875_v43, %v1425_v37  ;;  %vm1443_vm12 = vweird.f32 %v1875_v43 }
 0xf25   :  { %v1435_v59 = vsel %vm1434_vm11, %v1873_v35, %v1431_v44  ;;  %vm1444_vm14 = vmor %vm1442_vm13, %vm1443_vm12 }
 0xf26   :  { %v1446_v0 = vmul.f32 %v1435_v59, %v1412_v21  ;;  %v1438_v1 = vmul.f32 %v1875_v43, %v1437_v42 }
 0xf28   :  { %v1451_v3 = vmul.f32 %v1784_v47, %v1446_v0  ;;  %v1439_v25 = vmul.f32 0.5, %v1438_v1 }
 0xf2a   :  { %v1440_v6 = vsub.f32 1.5, %v1439_v25  ;;  %v1456_v7 = vadd.f32 %v1785_v2, %v1451_v3 }
 0xf2c   :  { %v1441_v9 = vmul.f32 %v1875_v43, %v1440_v6  ;;  %1695 = vmatmul.msk.f32.vlgmr.msra.gmra.mxu0 %vm150_vm1, %v1456_v7 }
 0xf2e   :  { %v1445_v17 = vsel %vm1444_vm14, %v1875_v43, %v1441_v9 }
 0xf2f   :  { %v1447_v10 = vmul.f32 %v1445_v17, %v1413_v22  ;;  %v1788_v17 = vld [vmem:[%s2757_s15] ss:$0 sm:$0xff] }
 0xf31   :  { %v1452_v11 = vmul.f32 %v1784_v47, %v1447_v10 }
 0xf33   :  { %v1457_v51 = vadd.f32 %v1785_v2, %v1452_v11 }
 0xf35   :  { %1696 = vmatmul.msk.f32.gmra.mxu0 %vm150_vm1, %v1457_v51  ;;  %vm1565_vm1 = vcmask 1040384  }
 0xfa9   :  { %v1491_v16 = vpop.f32.mrf.mxu0 }
 0xfaa   :  { %v1492_v19 = vadd.f32 %v1786_v4, %v1491_v16 }
 0xfac   :  { %v1499_v56 = vmul.f32 0.044715, %v1492_v19  ;;  %v1497_v24 = vmul.f32 0.5, %v1492_v19 }
 0xfae   :  { %v1501_v20 = vmul.f32 %v1499_v56, %v1492_v19 }
 0xfb0   :  { %v1503_v21 = vmul.f32 %v1501_v20, %v1492_v19 }
 0xfb2   :  { %v1494_v57 = vpop.f32.mrf.mxu0  ;;  %v1505_v32 = vadd.f32 %v1503_v21, %v1492_v19 }
 0xfb3   :  { %v1495_v50 = vadd.f32 %v1786_v4, %v1494_v57 }
 0xfb4   :  { %v1507_v45 = vmul.f32 0.7978846, %v1505_v32 }
 0xfb5   :  { %v1500_v22 = vmul.f32 0.044715, %v1495_v50  ;;  %v1498_v31 = vmul.f32 0.5, %v1495_v50 }
 0xfb6   :  { %1876 = vtanh.f32 %v1507_v45 }
 0xfb7   :  { %v1502_v63 = vmul.f32 %v1500_v22, %v1495_v50 }
 0xfb9   :  { %v1504_v5 = vmul.f32 %v1502_v63, %v1495_v50 }
 0xfbb   :  { %v1506_v23 = vadd.f32 %v1504_v5, %v1495_v50 }
 0xfbc   :  { %v1877_v27 = vpop.eup %1876 }
 0xfbd   :  { %v1511_v38 = vadd.f32 1.0, %v1877_v27  ;;  %v1508_v28 = vmul.f32 0.7978846, %v1506_v23 }
 0xfbf   :  { %v1513_v29 = vmul.f32 %v1511_v38, %v1497_v24  ;;  %1878 = vtanh.f32 %v1508_v28 }
 0xfc1   :  { %1553 = vmatmul.f32.vlgmr.msra.gmra.mxu1 %v1513_v29 }
 0xfc5   :  { %v1879_v60 = vpop.eup %1878 }
 0xfc6   :  { %v1512_v53 = vadd.f32 1.0, %v1879_v60 }
 0xfc8   :  { %v1514_v30 = vmul.f32 %v1512_v53, %v1498_v31 }
 0xfca   :  { %1556 = vmatmul.f32.gmra.mxu1 %v1514_v30 }
0x103e   :  { %v1554_v33 = vpop.f32.mrf.mxu1 }
0x103f   :  { %v1555_v35 = vadd.f32 %v1787_v34, %v1554_v33 }
0x1041   :  { %v1560_v39 = vadd.f32 %v1555_v35, %v2635_v62 }
0x1047   :  { %v1557_v61 = vpop.f32.mrf.mxu1 }
0x1048   :  { %v1558_v36 = vadd.f32 %v1787_v34, %v1557_v61 }
0x104a   :  { %v1561_v37 = vadd.f32 %v1558_v36, %v2640_v18 }
0x104c   :  { %v1563_v40 = vrot.slane %v1561_v37, 7 }
0x104e   :  { %v1566_v41 = vsel %vm1565_vm1, %v1560_v39, %v1563_v40 }
0x104f   :  { %v1570_v43 = vsel %vm1569_vm15, %v1566_v41, 0.0 }
0x1050   :  { %1571 = vadd.xlane.f32.xlu0 %v1570_v43 }
0x10c3   :  { %v1572_v44 = vpop.xlane.xlu0 %1571 }
0x10c4   :  { %v1573_v47 = vmul.f32 %v1572_v44, %v2106_v46 }
0x10c6   :  { %v1574_v42 = vsub.f32 %v1566_v41, %v1573_v47 }
0x10c8   :  { %v1575_v59 = vmul.f32 %v1574_v42, %v1574_v42 }
0x10ca   :  { %v1576_v0 = vsel %vm1569_vm15, %v1575_v59, 0.0 }
0x10cb   :  { %1577 = vadd.xlane.f32.xlu1 %v1576_v0 }
0x113e   :  { %v1578_v1 = vpop.xlane.xlu1 %1577 }
0x113f   :  { %v1579_v18 = vmul.f32 %v1578_v1, %v2106_v46  ;;  %v1789_v46 = vld [vmem:[%s2758_s16] ss:$0 sm:$0xff] }
0x1141   :  { %v1580_v2 = vadd.f32 1e-05, %v1579_v18 }
0x1143   :  { %1880 = vrsqrt.f32 %v1580_v2  ;;  %vm1587_vm2 = vweird.f32 %v1580_v2 }
0x1149   :  { %v1881_v62 = vpop.eup %1880 }
0x114a   :  { %v1582_v3 = vmul.f32 %v1881_v62, %v1580_v2  ;;  %vm1588_vm0 = vweird.f32 %v1881_v62 }
0x114b   :  { %vm1589_vm3 = vmor %vm1587_vm2, %vm1588_vm0 }
0x114c   :  { %v1583_v25 = vmul.f32 %v1881_v62, %v1582_v3 }
0x114e   :  { %v1584_v6 = vmul.f32 0.5, %v1583_v25 }
0x1150   :  { %v1585_v7 = vsub.f32 1.5, %v1584_v6 }
0x1152   :  { %v1586_v9 = vmul.f32 %v1881_v62, %v1585_v7 }
0x1154   :  { %v1590_v10 = vsel %vm1589_vm3, %v1881_v62, %v1586_v9 }
0x1155   :  { %v1591_v11 = vmul.f32 %v1590_v10, %v1574_v42 }
0x1157   :  { %v1595_v51 = vmul.f32 %v1788_v17, %v1591_v11 }
0x1159   :  { %v1599_v54 = vadd.f32 %v1789_v46, %v1595_v51 }
0x115b   :  { %1600 = vst.msk [vmem:[#allocation2] sm:$0x3] %vm1569_vm15, %v1599_v54 }
0x115c   :  { %1611 = dma.vmem_to_hbm [thread:$0]  %s1607_s8, 32, %s1609_s24, [#allocation3]  }
0x115d   :  { %1906 = dma.done.wait [#allocation3], 32  }
0x115e   :  { %1907 = vsyncadd [#allocation3], 4294967264 }
0x115f   :  { %1616 = vsyncpa [#allocation3], 1 }

</bundles_post_ra>
